<compile_context>
chip_gen: v6e
topology: v6e:2x2x1
jax: 0.10.0
libtpu: 0.0.40
codegen_flags: <defaults>
</compile_context>

<pallas_src>
import jax
import jax.numpy as jnp
from jax.experimental import pallas as pl
from jax.experimental.pallas import tpu as pltpu


def _round8(n):
    return -(-n // 8) * 8


def _packed_offsets(input_size, hidden_size):
    """Row offsets of each parameter block inside the packed (n_rows, 4H) buffer.

    Every segment starts on a sublane (multiple-of-8) boundary so the static
    in-kernel slices never straddle an (8, 128) tile.
    """
    o_wih0 = 0
    o_whh0 = o_wih0 + _round8(input_size)
    o_b0 = o_whh0 + _round8(hidden_size)
    o_wih1 = o_b0 + 8
    o_whh1 = o_wih1 + _round8(hidden_size)
    o_b1 = o_whh1 + _round8(hidden_size)
    o_fcw = o_b1 + 8
    n_rows = o_fcw + 8
    return (o_wih0, o_whh0, o_b0, o_wih1, o_whh1, o_b1, o_fcw), n_rows


def _lstm_fc_kernel(x_ref, w_ref, fcb_ref, out_ref):
    """Two LSTM layers over time + FC head; all state lives in vregs.

    x_ref   : (T*B, I)      time-major rows (row t*B + b == x[b, t, :])
    w_ref   : (n_rows, 4H)  packed parameters (see _packed_offsets), rows are:
                wih0 (I,4H) | whh0 (H,4H) | b0 (1,4H) | wih1 (H,4H) |
                whh1 (H,4H) | b1 (1,4H) | fc_w (1,H in first H lanes)
    fcb_ref : (1,)          fc bias (SMEM scalar)
    out_ref : (B, 1)
    PyTorch gate order: [i, f, g, o].
    """
    B = out_ref.shape[0]
    H4 = w_ref.shape[1]
    H = H4 // 4
    I = x_ref.shape[1]
    T = x_ref.shape[0] // B

    (o_wih0, o_whh0, o_b0, o_wih1, o_whh1, o_b1, o_fcw), _ = _packed_offsets(I, H)

    # ---- loop-invariant loads / broadcasts, hoisted once. -------------------
    whh0 = w_ref[o_whh0:o_whh0 + H, :]                      # (H, 4H)
    wih1 = w_ref[o_wih1:o_wih1 + H, :]                      # (H, 4H)
    whh1 = w_ref[o_whh1:o_whh1 + H, :]                      # (H, 4H)
    b1b = jnp.broadcast_to(w_ref[o_b1:o_b1 + 1, :], (B, H4))  # (B, 4H)
    fcw = w_ref[o_fcw:o_fcw + 1, 0:H]                       # (1, H)

    # ---- layer-0 input projection hoisted out of the recurrence. ------------
    # One (T*B, I) x (I, 4H) matmul (bias folded in): removes one matmul from
    # the per-step serial chain and gives much better MXU row occupancy.
    gx0 = (jnp.dot(x_ref[...], w_ref[o_wih0:o_wih0 + I, :],
                   preferred_element_type=jnp.float32)
           + w_ref[o_b0:o_b0 + 1, :])                       # (T*B, 4H)

    h0 = jnp.zeros((B, H), jnp.float32)
    c0 = jnp.zeros((B, H), jnp.float32)
    h1 = jnp.zeros((B, H), jnp.float32)
    c1 = jnp.zeros((B, H), jnp.float32)

    # ---- fully-unrolled time loop; state lives in vregs. --------------------
    for t in range(T):
        # layer 0: only the recurrent matmul remains on the critical path.
        g0 = gx0[t * B:(t + 1) * B, :] + jnp.dot(
            h0, whh0, preferred_element_type=jnp.float32)   # (B, 4H)
        sg0 = jax.nn.sigmoid(g0)        # full-width EUP op
        th0 = jnp.tanh(g0)              # full-width EUP op
        c0 = sg0[:, H:2 * H] * c0 + sg0[:, 0:H] * th0[:, 2 * H:3 * H]
        h0 = sg0[:, 3 * H:4 * H] * jnp.tanh(c0)

        # layer 1: two back-to-back MXU matmuls (no lane-axis concat on the
        # serial path; they pipeline through the MXU result FIFO/MRB).
        g1 = (jnp.dot(h0, wih1, preferred_element_type=jnp.float32)
              + jnp.dot(h1, whh1, preferred_element_type=jnp.float32)
              + b1b)                                        # (B, 4H)
        sg1 = jax.nn.sigmoid(g1)
        th1 = jnp.tanh(g1)
        c1 = sg1[:, H:2 * H] * c1 + sg1[:, 0:H] * th1[:, 2 * H:3 * H]
        h1 = sg1[:, 3 * H:4 * H] * jnp.tanh(c1)

    # FC head on the final top-layer hidden state: VPU multiply + lane
    # reduction (skips an N=1 MXU push/pop and the masked-store tail).
    out_ref[...] = (jnp.sum(h1 * fcw, axis=-1, keepdims=True)
                    + fcb_ref[0]).astype(out_ref.dtype)


def lstm_regressor_forward(x, params):
    """x: (B, T, input_size) float32.  Returns (B, 1) float32."""
    B, T, I = x.shape
    H = params["w_hh_l0"].shape[1]
    H4 = 4 * H

    # Time-major, flattened to (T*B, I) so the hoisted layer-0 projection is a
    # single dense matmul inside the kernel.  (At these shapes the wrapper
    # transpose is negligible; at large T*B express it via a T-chunk index_map
    # instead.)
    x2d = jnp.transpose(x, (1, 0, 2)).astype(jnp.float32).reshape(T * B, I)

    # ---- pack all small parameters into one sublane-padded buffer -----------
    offs, n_rows = _packed_offsets(I, H)
    o_wih0, o_whh0, o_b0, o_wih1, o_whh1, o_b1, o_fcw = offs

    f32 = lambda a: a.astype(jnp.float32)
    packed = jnp.zeros((n_rows, H4), jnp.float32)
    packed = packed.at[o_wih0:o_wih0 + I, :].set(f32(jnp.transpose(params["w_ih_l0"])))
    packed = packed.at[o_whh0:o_whh0 + H, :].set(f32(jnp.transpose(params["w_hh_l0"])))
    packed = packed.at[o_b0, :].set(f32(params["b_ih_l0"] + params["b_hh_l0"]))
    packed = packed.at[o_wih1:o_wih1 + H, :].set(f32(jnp.transpose(params["w_ih_l1"])))
    packed = packed.at[o_whh1:o_whh1 + H, :].set(f32(jnp.transpose(params["w_hh_l1"])))
    packed = packed.at[o_b1, :].set(f32(params["b_ih_l1"] + params["b_hh_l1"]))
    packed = packed.at[o_fcw, 0:H].set(f32(params["fc_w"][0]))
    fcb = params["fc_b"].reshape(1).astype(jnp.float32)      # SMEM scalar

    full = lambda shape: pl.BlockSpec(shape, lambda i: (0,) * len(shape))

    out = pl.pallas_call(
        _lstm_fc_kernel,
        out_shape=jax.ShapeDtypeStruct((B, 1), jnp.float32),
        grid_spec=pltpu.PrefetchScalarGridSpec(
            num_scalar_prefetch=0,
            grid=(1,),
            in_specs=[
                full((T * B, I)),                            # activations
                full((n_rows, H4)),                          # packed weights
                pl.BlockSpec(memory_space=pltpu.MemorySpace.SMEM),  # fc bias
            ],
            out_specs=full((B, 1)),
        ),
        compiler_params=pltpu.CompilerParams(
            dimension_semantics=("arbitrary",),
            vmem_limit_bytes=32 * 1024 * 1024),
    )(x2d, packed, fcb)
    return out


def _reference_forward(x, params):
    """Pure-JAX reference implementing nn.LSTM(2 layers) + Linear."""
    B, T, I = x.shape
    H = params["w_hh_l0"].shape[1]

    def run_layer(seq, wih, whh, bih, bhh):
        h = jnp.zeros((B, H), jnp.float32)
        c = jnp.zeros((B, H), jnp.float32)
        outs = []
        for t in range(T):
            g = seq[:, t, :] @ wih.T + h @ whh.T + bih + bhh
            i_g = jax.nn.sigmoid(g[:, 0:H])
            f_g = jax.nn.sigmoid(g[:, H:2 * H])
            g_g = jnp.tanh(g[:, 2 * H:3 * H])
            o_g = jax.nn.sigmoid(g[:, 3 * H:4 * H])
            c = f_g * c + i_g * g_g
            h = o_g * jnp.tanh(c)
            outs.append(h)
        return jnp.stack(outs, axis=1)

    h1 = run_layer(x, params["w_ih_l0"], params["w_hh_l0"],
                   params["b_ih_l0"], params["b_hh_l0"])
    h2 = run_layer(h1, params["w_ih_l1"], params["w_hh_l1"],
                   params["b_ih_l1"], params["b_hh_l1"])
    last = h2[:, -1, :]
    return last @ params["fc_w"].T + params["fc_b"]


if __name__ == "__main__":
    # Small shapes consistent with the module's forward:
    # x: (batch=2, seq=8, input_size=4), hidden_size=32, num_layers=2.
    B, T, I, H = 2, 8, 4, 32

    key = jax.random.PRNGKey(0)
    ks = jax.random.split(key, 12)
    scale = 0.1
    params = {
        "w_ih_l0": scale * jax.random.normal(ks[0], (4 * H, I), jnp.float32),
        "w_hh_l0": scale * jax.random.normal(ks[1], (4 * H, H), jnp.float32),
        "b_ih_l0": scale * jax.random.normal(ks[2], (4 * H,), jnp.float32),
        "b_hh_l0": scale * jax.random.normal(ks[3], (4 * H,), jnp.float32),
        "w_ih_l1": scale * jax.random.normal(ks[4], (4 * H, H), jnp.float32),
        "w_hh_l1": scale * jax.random.normal(ks[5], (4 * H, H), jnp.float32),
        "b_ih_l1": scale * jax.random.normal(ks[6], (4 * H,), jnp.float32),
        "b_hh_l1": scale * jax.random.normal(ks[7], (4 * H,), jnp.float32),
        "fc_w":    scale * jax.random.normal(ks[8], (1, H), jnp.float32),
        "fc_b":    scale * jax.random.normal(ks[9], (1,), jnp.float32),
    }
    x = jax.random.normal(ks[10], (B, T, I), jnp.float32)

    y = lstm_regressor_forward(x, params)
    y = jax.block_until_ready(y)

    y_ref = _reference_forward(x, params)
    assert y.shape == (B, 1)
    # Slightly relaxed tolerance: the hoisted layer-0 projection, the split
    # layer-1 matmuls, and the VPU-reduction FC head change f32 accumulation
    # order vs. the per-step reference.
    assert jnp.allclose(y, y_ref, atol=1e-4, rtol=1e-4), (y, y_ref)

    print("KERNEL_OK")
</pallas_src>

<mosaic_0001>
module attributes {stable_mosaic.version = 11 : i64} {
  func.func @_lstm_fc_kernel(%arg0: i32, %arg1: memref<16x4xf32, #tpu.memory_space<vmem>>, %arg2: memref<128x128xf32, #tpu.memory_space<vmem>>, %arg3: memref<1xf32, #tpu.memory_space<smem>>, %arg4: memref<2x1xf32, #tpu.memory_space<vmem>>) attributes {dimension_semantics = [#tpu.dimension_semantics<arbitrary>], iteration_bounds = array<i64: 1>, scalar_prefetch = 0 : i64, scratch_operands = 0 : i64, tpu.core_type = #tpu.core_type<tc>, window_params = [{pipeline_mode = #tpu.pipeline_mode<synchronous>, transform_indices = @transform_0, window_bounds = array<i64: 16, 4>}, {pipeline_mode = #tpu.pipeline_mode<synchronous>, transform_indices = @transform_1, window_bounds = array<i64: 128, 128>}, {transform_indices = @transform_2, window_bounds = array<i64: 1>}, {pipeline_mode = #tpu.pipeline_mode<synchronous>, transform_indices = @transform_3, window_bounds = array<i64: 2, 1>}]} {
    %c8 = arith.constant 8 : index
    %c0 = arith.constant 0 : index
    %0 = vector.load %arg2[%c8, %c0] : memref<128x128xf32, #tpu.memory_space<vmem>>, vector<32x128xf32>
    %c48 = arith.constant 48 : index
    %c0_0 = arith.constant 0 : index
    %1 = vector.load %arg2[%c48, %c0_0] : memref<128x128xf32, #tpu.memory_space<vmem>>, vector<32x128xf32>
    %c80 = arith.constant 80 : index
    %c0_1 = arith.constant 0 : index
    %2 = vector.load %arg2[%c80, %c0_1] : memref<128x128xf32, #tpu.memory_space<vmem>>, vector<32x128xf32>
    %c112 = arith.constant 112 : index
    %c0_2 = arith.constant 0 : index
    %3 = vector.load %arg2[%c112, %c0_2] : memref<128x128xf32, #tpu.memory_space<vmem>>, vector<1x128xf32>
    %4 = vector.shape_cast %3 : vector<1x128xf32> to vector<1x128xf32>
    %5 = vector.broadcast %4 : vector<1x128xf32> to vector<2x128xf32>
    %c120 = arith.constant 120 : index
    %c0_3 = arith.constant 0 : index
    %6 = vector.load %arg2[%c120, %c0_3] : memref<128x128xf32, #tpu.memory_space<vmem>>, vector<1x32xf32>
    %c0_4 = arith.constant 0 : index
    %c0_5 = arith.constant 0 : index
    %7 = vector.load %arg1[%c0_4, %c0_5] : memref<16x4xf32, #tpu.memory_space<vmem>>, vector<16x4xf32>
    %c0_6 = arith.constant 0 : index
    %c0_7 = arith.constant 0 : index
    %8 = vector.load %arg2[%c0_6, %c0_7] : memref<128x128xf32, #tpu.memory_space<vmem>>, vector<4x128xf32>
    %cst = arith.constant dense<0.000000e+00> : vector<16x128xf32>
    %9 = tpu.matmul %7, %8, %cst {dimension_numbers = #tpu.dot_dimension_numbers<[1], [0], [0], [1], [0, 0, 1, 1], [], []>} : vector<16x4xf32>, vector<4x128xf32>, vector<16x128xf32> -> vector<16x128xf32>
    %c40 = arith.constant 40 : index
    %c0_8 = arith.constant 0 : index
    %10 = vector.load %arg2[%c40, %c0_8] : memref<128x128xf32, #tpu.memory_space<vmem>>, vector<1x128xf32>
    %11 = vector.broadcast %10 : vector<1x128xf32> to vector<16x128xf32>
    %12 = arith.addf %9, %11 : vector<16x128xf32>
    %cst_9 = arith.constant 0.000000e+00 : f32
    %13 = vector.broadcast %cst_9 : f32 to vector<2x32xf32>
    %cst_10 = arith.constant 0.000000e+00 : f32
    %14 = vector.broadcast %cst_10 : f32 to vector<2x32xf32>
    %cst_11 = arith.constant 0.000000e+00 : f32
    %15 = vector.broadcast %cst_11 : f32 to vector<2x32xf32>
    %cst_12 = arith.constant 0.000000e+00 : f32
    %16 = vector.broadcast %cst_12 : f32 to vector<2x32xf32>
    %17 = vector.extract_strided_slice %12 {offsets = [0, 0], sizes = [2, 128], strides = [1, 1]} : vector<16x128xf32> to vector<2x128xf32>
    %cst_13 = arith.constant dense<0.000000e+00> : vector<2x128xf32>
    %18 = tpu.matmul %13, %0, %cst_13 {dimension_numbers = #tpu.dot_dimension_numbers<[1], [0], [0], [1], [0, 0, 1, 1], [], []>} : vector<2x32xf32>, vector<32x128xf32>, vector<2x128xf32> -> vector<2x128xf32>
    %19 = arith.addf %17, %18 : vector<2x128xf32>
    %20 = arith.negf %19 : vector<2x128xf32>
    %21 = math.exp %20 : vector<2x128xf32>
    %cst_14 = arith.constant 1.000000e+00 : f32
    %22 = vector.broadcast %cst_14 : f32 to vector<2x128xf32>
    %23 = arith.addf %22, %21 : vector<2x128xf32>
    %24 = arith.divf %22, %23 : vector<2x128xf32>
    %25 = math.tanh %19 : vector<2x128xf32>
    %26 = vector.extract_strided_slice %24 {offsets = [0, 32], sizes = [2, 32], strides = [1, 1]} : vector<2x128xf32> to vector<2x32xf32>
    %27 = arith.mulf %26, %14 : vector<2x32xf32>
    %28 = vector.extract_strided_slice %24 {offsets = [0, 0], sizes = [2, 32], strides = [1, 1]} : vector<2x128xf32> to vector<2x32xf32>
    %29 = vector.extract_strided_slice %25 {offsets = [0, 64], sizes = [2, 32], strides = [1, 1]} : vector<2x128xf32> to vector<2x32xf32>
    %30 = arith.mulf %28, %29 : vector<2x32xf32>
    %31 = arith.addf %27, %30 : vector<2x32xf32>
    %32 = vector.extract_strided_slice %24 {offsets = [0, 96], sizes = [2, 32], strides = [1, 1]} : vector<2x128xf32> to vector<2x32xf32>
    %33 = math.tanh %31 : vector<2x32xf32>
    %34 = arith.mulf %32, %33 : vector<2x32xf32>
    %cst_15 = arith.constant dense<0.000000e+00> : vector<2x128xf32>
    %35 = tpu.matmul %34, %1, %cst_15 {dimension_numbers = #tpu.dot_dimension_numbers<[1], [0], [0], [1], [0, 0, 1, 1], [], []>} : vector<2x32xf32>, vector<32x128xf32>, vector<2x128xf32> -> vector<2x128xf32>
    %cst_16 = arith.constant dense<0.000000e+00> : vector<2x128xf32>
    %36 = tpu.matmul %15, %2, %cst_16 {dimension_numbers = #tpu.dot_dimension_numbers<[1], [0], [0], [1], [0, 0, 1, 1], [], []>} : vector<2x32xf32>, vector<32x128xf32>, vector<2x128xf32> -> vector<2x128xf32>
    %37 = arith.addf %35, %36 : vector<2x128xf32>
    %38 = arith.addf %37, %5 : vector<2x128xf32>
    %39 = arith.negf %38 : vector<2x128xf32>
    %40 = math.exp %39 : vector<2x128xf32>
    %cst_17 = arith.constant 1.000000e+00 : f32
    %41 = vector.broadcast %cst_17 : f32 to vector<2x128xf32>
    %42 = arith.addf %41, %40 : vector<2x128xf32>
    %43 = arith.divf %41, %42 : vector<2x128xf32>
    %44 = math.tanh %38 : vector<2x128xf32>
    %45 = vector.extract_strided_slice %43 {offsets = [0, 32], sizes = [2, 32], strides = [1, 1]} : vector<2x128xf32> to vector<2x32xf32>
    %46 = arith.mulf %45, %16 : vector<2x32xf32>
    %47 = vector.extract_strided_slice %43 {offsets = [0, 0], sizes = [2, 32], strides = [1, 1]} : vector<2x128xf32> to vector<2x32xf32>
    %48 = vector.extract_strided_slice %44 {offsets = [0, 64], sizes = [2, 32], strides = [1, 1]} : vector<2x128xf32> to vector<2x32xf32>
    %49 = arith.mulf %47, %48 : vector<2x32xf32>
    %50 = arith.addf %46, %49 : vector<2x32xf32>
    %51 = vector.extract_strided_slice %43 {offsets = [0, 96], sizes = [2, 32], strides = [1, 1]} : vector<2x128xf32> to vector<2x32xf32>
    %52 = math.tanh %50 : vector<2x32xf32>
    %53 = arith.mulf %51, %52 : vector<2x32xf32>
    %54 = vector.extract_strided_slice %12 {offsets = [2, 0], sizes = [2, 128], strides = [1, 1]} : vector<16x128xf32> to vector<2x128xf32>
    %cst_18 = arith.constant dense<0.000000e+00> : vector<2x128xf32>
    %55 = tpu.matmul %34, %0, %cst_18 {dimension_numbers = #tpu.dot_dimension_numbers<[1], [0], [0], [1], [0, 0, 1, 1], [], []>} : vector<2x32xf32>, vector<32x128xf32>, vector<2x128xf32> -> vector<2x128xf32>
    %56 = arith.addf %54, %55 : vector<2x128xf32>
    %57 = arith.negf %56 : vector<2x128xf32>
    %58 = math.exp %57 : vector<2x128xf32>
    %cst_19 = arith.constant 1.000000e+00 : f32
    %59 = vector.broadcast %cst_19 : f32 to vector<2x128xf32>
    %60 = arith.addf %59, %58 : vector<2x128xf32>
    %61 = arith.divf %59, %60 : vector<2x128xf32>
    %62 = math.tanh %56 : vector<2x128xf32>
    %63 = vector.extract_strided_slice %61 {offsets = [0, 32], sizes = [2, 32], strides = [1, 1]} : vector<2x128xf32> to vector<2x32xf32>
    %64 = arith.mulf %63, %31 : vector<2x32xf32>
    %65 = vector.extract_strided_slice %61 {offsets = [0, 0], sizes = [2, 32], strides = [1, 1]} : vector<2x128xf32> to vector<2x32xf32>
    %66 = vector.extract_strided_slice %62 {offsets = [0, 64], sizes = [2, 32], strides = [1, 1]} : vector<2x128xf32> to vector<2x32xf32>
    %67 = arith.mulf %65, %66 : vector<2x32xf32>
    %68 = arith.addf %64, %67 : vector<2x32xf32>
    %69 = vector.extract_strided_slice %61 {offsets = [0, 96], sizes = [2, 32], strides = [1, 1]} : vector<2x128xf32> to vector<2x32xf32>
    %70 = math.tanh %68 : vector<2x32xf32>
    %71 = arith.mulf %69, %70 : vector<2x32xf32>
    %cst_20 = arith.constant dense<0.000000e+00> : vector<2x128xf32>
    %72 = tpu.matmul %71, %1, %cst_20 {dimension_numbers = #tpu.dot_dimension_numbers<[1], [0], [0], [1], [0, 0, 1, 1], [], []>} : vector<2x32xf32>, vector<32x128xf32>, vector<2x128xf32> -> vector<2x128xf32>
    %cst_21 = arith.constant dense<0.000000e+00> : vector<2x128xf32>
    %73 = tpu.matmul %53, %2, %cst_21 {dimension_numbers = #tpu.dot_dimension_numbers<[1], [0], [0], [1], [0, 0, 1, 1], [], []>} : vector<2x32xf32>, vector<32x128xf32>, vector<2x128xf32> -> vector<2x128xf32>
    %74 = arith.addf %72, %73 : vector<2x128xf32>
    %75 = arith.addf %74, %5 : vector<2x128xf32>
    %76 = arith.negf %75 : vector<2x128xf32>
    %77 = math.exp %76 : vector<2x128xf32>
    %cst_22 = arith.constant 1.000000e+00 : f32
    %78 = vector.broadcast %cst_22 : f32 to vector<2x128xf32>
    %79 = arith.addf %78, %77 : vector<2x128xf32>
    %80 = arith.divf %78, %79 : vector<2x128xf32>
    %81 = math.tanh %75 : vector<2x128xf32>
    %82 = vector.extract_strided_slice %80 {offsets = [0, 32], sizes = [2, 32], strides = [1, 1]} : vector<2x128xf32> to vector<2x32xf32>
    %83 = arith.mulf %82, %50 : vector<2x32xf32>
    %84 = vector.extract_strided_slice %80 {offsets = [0, 0], sizes = [2, 32], strides = [1, 1]} : vector<2x128xf32> to vector<2x32xf32>
    %85 = vector.extract_strided_slice %81 {offsets = [0, 64], sizes = [2, 32], strides = [1, 1]} : vector<2x128xf32> to vector<2x32xf32>
    %86 = arith.mulf %84, %85 : vector<2x32xf32>
    %87 = arith.addf %83, %86 : vector<2x32xf32>
    %88 = vector.extract_strided_slice %80 {offsets = [0, 96], sizes = [2, 32], strides = [1, 1]} : vector<2x128xf32> to vector<2x32xf32>
    %89 = math.tanh %87 : vector<2x32xf32>
    %90 = arith.mulf %88, %89 : vector<2x32xf32>
    %91 = vector.extract_strided_slice %12 {offsets = [4, 0], sizes = [2, 128], strides = [1, 1]} : vector<16x128xf32> to vector<2x128xf32>
    %cst_23 = arith.constant dense<0.000000e+00> : vector<2x128xf32>
    %92 = tpu.matmul %71, %0, %cst_23 {dimension_numbers = #tpu.dot_dimension_numbers<[1], [0], [0], [1], [0, 0, 1, 1], [], []>} : vector<2x32xf32>, vector<32x128xf32>, vector<2x128xf32> -> vector<2x128xf32>
    %93 = arith.addf %91, %92 : vector<2x128xf32>
    %94 = arith.negf %93 : vector<2x128xf32>
    %95 = math.exp %94 : vector<2x128xf32>
    %cst_24 = arith.constant 1.000000e+00 : f32
    %96 = vector.broadcast %cst_24 : f32 to vector<2x128xf32>
    %97 = arith.addf %96, %95 : vector<2x128xf32>
    %98 = arith.divf %96, %97 : vector<2x128xf32>
    %99 = math.tanh %93 : vector<2x128xf32>
    %100 = vector.extract_strided_slice %98 {offsets = [0, 32], sizes = [2, 32], strides = [1, 1]} : vector<2x128xf32> to vector<2x32xf32>
    %101 = arith.mulf %100, %68 : vector<2x32xf32>
    %102 = vector.extract_strided_slice %98 {offsets = [0, 0], sizes = [2, 32], strides = [1, 1]} : vector<2x128xf32> to vector<2x32xf32>
    %103 = vector.extract_strided_slice %99 {offsets = [0, 64], sizes = [2, 32], strides = [1, 1]} : vector<2x128xf32> to vector<2x32xf32>
    %104 = arith.mulf %102, %103 : vector<2x32xf32>
    %105 = arith.addf %101, %104 : vector<2x32xf32>
    %106 = vector.extract_strided_slice %98 {offsets = [0, 96], sizes = [2, 32], strides = [1, 1]} : vector<2x128xf32> to vector<2x32xf32>
    %107 = math.tanh %105 : vector<2x32xf32>
    %108 = arith.mulf %106, %107 : vector<2x32xf32>
    %cst_25 = arith.constant dense<0.000000e+00> : vector<2x128xf32>
    %109 = tpu.matmul %108, %1, %cst_25 {dimension_numbers = #tpu.dot_dimension_numbers<[1], [0], [0], [1], [0, 0, 1, 1], [], []>} : vector<2x32xf32>, vector<32x128xf32>, vector<2x128xf32> -> vector<2x128xf32>
    %cst_26 = arith.constant dense<0.000000e+00> : vector<2x128xf32>
    %110 = tpu.matmul %90, %2, %cst_26 {dimension_numbers = #tpu.dot_dimension_numbers<[1], [0], [0], [1], [0, 0, 1, 1], [], []>} : vector<2x32xf32>, vector<32x128xf32>, vector<2x128xf32> -> vector<2x128xf32>
    %111 = arith.addf %109, %110 : vector<2x128xf32>
    %112 = arith.addf %111, %5 : vector<2x128xf32>
    %113 = arith.negf %112 : vector<2x128xf32>
    %114 = math.exp %113 : vector<2x128xf32>
    %cst_27 = arith.constant 1.000000e+00 : f32
    %115 = vector.broadcast %cst_27 : f32 to vector<2x128xf32>
    %116 = arith.addf %115, %114 : vector<2x128xf32>
    %117 = arith.divf %115, %116 : vector<2x128xf32>
    %118 = math.tanh %112 : vector<2x128xf32>
    %119 = vector.extract_strided_slice %117 {offsets = [0, 32], sizes = [2, 32], strides = [1, 1]} : vector<2x128xf32> to vector<2x32xf32>
    %120 = arith.mulf %119, %87 : vector<2x32xf32>
    %121 = vector.extract_strided_slice %117 {offsets = [0, 0], sizes = [2, 32], strides = [1, 1]} : vector<2x128xf32> to vector<2x32xf32>
    %122 = vector.extract_strided_slice %118 {offsets = [0, 64], sizes = [2, 32], strides = [1, 1]} : vector<2x128xf32> to vector<2x32xf32>
    %123 = arith.mulf %121, %122 : vector<2x32xf32>
    %124 = arith.addf %120, %123 : vector<2x32xf32>
    %125 = vector.extract_strided_slice %117 {offsets = [0, 96], sizes = [2, 32], strides = [1, 1]} : vector<2x128xf32> to vector<2x32xf32>
    %126 = math.tanh %124 : vector<2x32xf32>
    %127 = arith.mulf %125, %126 : vector<2x32xf32>
    %128 = vector.extract_strided_slice %12 {offsets = [6, 0], sizes = [2, 128], strides = [1, 1]} : vector<16x128xf32> to vector<2x128xf32>
    %cst_28 = arith.constant dense<0.000000e+00> : vector<2x128xf32>
    %129 = tpu.matmul %108, %0, %cst_28 {dimension_numbers = #tpu.dot_dimension_numbers<[1], [0], [0], [1], [0, 0, 1, 1], [], []>} : vector<2x32xf32>, vector<32x128xf32>, vector<2x128xf32> -> vector<2x128xf32>
    %130 = arith.addf %128, %129 : vector<2x128xf32>
    %131 = arith.negf %130 : vector<2x128xf32>
    %132 = math.exp %131 : vector<2x128xf32>
    %cst_29 = arith.constant 1.000000e+00 : f32
    %133 = vector.broadcast %cst_29 : f32 to vector<2x128xf32>
    %134 = arith.addf %133, %132 : vector<2x128xf32>
    %135 = arith.divf %133, %134 : vector<2x128xf32>
    %136 = math.tanh %130 : vector<2x128xf32>
    %137 = vector.extract_strided_slice %135 {offsets = [0, 32], sizes = [2, 32], strides = [1, 1]} : vector<2x128xf32> to vector<2x32xf32>
    %138 = arith.mulf %137, %105 : vector<2x32xf32>
    %139 = vector.extract_strided_slice %135 {offsets = [0, 0], sizes = [2, 32], strides = [1, 1]} : vector<2x128xf32> to vector<2x32xf32>
    %140 = vector.extract_strided_slice %136 {offsets = [0, 64], sizes = [2, 32], strides = [1, 1]} : vector<2x128xf32> to vector<2x32xf32>
    %141 = arith.mulf %139, %140 : vector<2x32xf32>
    %142 = arith.addf %138, %141 : vector<2x32xf32>
    %143 = vector.extract_strided_slice %135 {offsets = [0, 96], sizes = [2, 32], strides = [1, 1]} : vector<2x128xf32> to vector<2x32xf32>
    %144 = math.tanh %142 : vector<2x32xf32>
    %145 = arith.mulf %143, %144 : vector<2x32xf32>
    %cst_30 = arith.constant dense<0.000000e+00> : vector<2x128xf32>
    %146 = tpu.matmul %145, %1, %cst_30 {dimension_numbers = #tpu.dot_dimension_numbers<[1], [0], [0], [1], [0, 0, 1, 1], [], []>} : vector<2x32xf32>, vector<32x128xf32>, vector<2x128xf32> -> vector<2x128xf32>
    %cst_31 = arith.constant dense<0.000000e+00> : vector<2x128xf32>
    %147 = tpu.matmul %127, %2, %cst_31 {dimension_numbers = #tpu.dot_dimension_numbers<[1], [0], [0], [1], [0, 0, 1, 1], [], []>} : vector<2x32xf32>, vector<32x128xf32>, vector<2x128xf32> -> vector<2x128xf32>
    %148 = arith.addf %146, %147 : vector<2x128xf32>
    %149 = arith.addf %148, %5 : vector<2x128xf32>
    %150 = arith.negf %149 : vector<2x128xf32>
    %151 = math.exp %150 : vector<2x128xf32>
    %cst_32 = arith.constant 1.000000e+00 : f32
    %152 = vector.broadcast %cst_32 : f32 to vector<2x128xf32>
    %153 = arith.addf %152, %151 : vector<2x128xf32>
    %154 = arith.divf %152, %153 : vector<2x128xf32>
    %155 = math.tanh %149 : vector<2x128xf32>
    %156 = vector.extract_strided_slice %154 {offsets = [0, 32], sizes = [2, 32], strides = [1, 1]} : vector<2x128xf32> to vector<2x32xf32>
    %157 = arith.mulf %156, %124 : vector<2x32xf32>
    %158 = vector.extract_strided_slice %154 {offsets = [0, 0], sizes = [2, 32], strides = [1, 1]} : vector<2x128xf32> to vector<2x32xf32>
    %159 = vector.extract_strided_slice %155 {offsets = [0, 64], sizes = [2, 32], strides = [1, 1]} : vector<2x128xf32> to vector<2x32xf32>
    %160 = arith.mulf %158, %159 : vector<2x32xf32>
    %161 = arith.addf %157, %160 : vector<2x32xf32>
    %162 = vector.extract_strided_slice %154 {offsets = [0, 96], sizes = [2, 32], strides = [1, 1]} : vector<2x128xf32> to vector<2x32xf32>
    %163 = math.tanh %161 : vector<2x32xf32>
    %164 = arith.mulf %162, %163 : vector<2x32xf32>
    %165 = vector.extract_strided_slice %12 {offsets = [8, 0], sizes = [2, 128], strides = [1, 1]} : vector<16x128xf32> to vector<2x128xf32>
    %cst_33 = arith.constant dense<0.000000e+00> : vector<2x128xf32>
    %166 = tpu.matmul %145, %0, %cst_33 {dimension_numbers = #tpu.dot_dimension_numbers<[1], [0], [0], [1], [0, 0, 1, 1], [], []>} : vector<2x32xf32>, vector<32x128xf32>, vector<2x128xf32> -> vector<2x128xf32>
    %167 = arith.addf %165, %166 : vector<2x128xf32>
    %168 = arith.negf %167 : vector<2x128xf32>
    %169 = math.exp %168 : vector<2x128xf32>
    %cst_34 = arith.constant 1.000000e+00 : f32
    %170 = vector.broadcast %cst_34 : f32 to vector<2x128xf32>
    %171 = arith.addf %170, %169 : vector<2x128xf32>
    %172 = arith.divf %170, %171 : vector<2x128xf32>
    %173 = math.tanh %167 : vector<2x128xf32>
    %174 = vector.extract_strided_slice %172 {offsets = [0, 32], sizes = [2, 32], strides = [1, 1]} : vector<2x128xf32> to vector<2x32xf32>
    %175 = arith.mulf %174, %142 : vector<2x32xf32>
    %176 = vector.extract_strided_slice %172 {offsets = [0, 0], sizes = [2, 32], strides = [1, 1]} : vector<2x128xf32> to vector<2x32xf32>
    %177 = vector.extract_strided_slice %173 {offsets = [0, 64], sizes = [2, 32], strides = [1, 1]} : vector<2x128xf32> to vector<2x32xf32>
    %178 = arith.mulf %176, %177 : vector<2x32xf32>
    %179 = arith.addf %175, %178 : vector<2x32xf32>
    %180 = vector.extract_strided_slice %172 {offsets = [0, 96], sizes = [2, 32], strides = [1, 1]} : vector<2x128xf32> to vector<2x32xf32>
    %181 = math.tanh %179 : vector<2x32xf32>
    %182 = arith.mulf %180, %181 : vector<2x32xf32>
    %cst_35 = arith.constant dense<0.000000e+00> : vector<2x128xf32>
    %183 = tpu.matmul %182, %1, %cst_35 {dimension_numbers = #tpu.dot_dimension_numbers<[1], [0], [0], [1], [0, 0, 1, 1], [], []>} : vector<2x32xf32>, vector<32x128xf32>, vector<2x128xf32> -> vector<2x128xf32>
    %cst_36 = arith.constant dense<0.000000e+00> : vector<2x128xf32>
    %184 = tpu.matmul %164, %2, %cst_36 {dimension_numbers = #tpu.dot_dimension_numbers<[1], [0], [0], [1], [0, 0, 1, 1], [], []>} : vector<2x32xf32>, vector<32x128xf32>, vector<2x128xf32> -> vector<2x128xf32>
    %185 = arith.addf %183, %184 : vector<2x128xf32>
    %186 = arith.addf %185, %5 : vector<2x128xf32>
    %187 = arith.negf %186 : vector<2x128xf32>
    %188 = math.exp %187 : vector<2x128xf32>
    %cst_37 = arith.constant 1.000000e+00 : f32
    %189 = vector.broadcast %cst_37 : f32 to vector<2x128xf32>
    %190 = arith.addf %189, %188 : vector<2x128xf32>
    %191 = arith.divf %189, %190 : vector<2x128xf32>
    %192 = math.tanh %186 : vector<2x128xf32>
    %193 = vector.extract_strided_slice %191 {offsets = [0, 32], sizes = [2, 32], strides = [1, 1]} : vector<2x128xf32> to vector<2x32xf32>
    %194 = arith.mulf %193, %161 : vector<2x32xf32>
    %195 = vector.extract_strided_slice %191 {offsets = [0, 0], sizes = [2, 32], strides = [1, 1]} : vector<2x128xf32> to vector<2x32xf32>
    %196 = vector.extract_strided_slice %192 {offsets = [0, 64], sizes = [2, 32], strides = [1, 1]} : vector<2x128xf32> to vector<2x32xf32>
    %197 = arith.mulf %195, %196 : vector<2x32xf32>
    %198 = arith.addf %194, %197 : vector<2x32xf32>
    %199 = vector.extract_strided_slice %191 {offsets = [0, 96], sizes = [2, 32], strides = [1, 1]} : vector<2x128xf32> to vector<2x32xf32>
    %200 = math.tanh %198 : vector<2x32xf32>
    %201 = arith.mulf %199, %200 : vector<2x32xf32>
    %202 = vector.extract_strided_slice %12 {offsets = [10, 0], sizes = [2, 128], strides = [1, 1]} : vector<16x128xf32> to vector<2x128xf32>
    %cst_38 = arith.constant dense<0.000000e+00> : vector<2x128xf32>
    %203 = tpu.matmul %182, %0, %cst_38 {dimension_numbers = #tpu.dot_dimension_numbers<[1], [0], [0], [1], [0, 0, 1, 1], [], []>} : vector<2x32xf32>, vector<32x128xf32>, vector<2x128xf32> -> vector<2x128xf32>
    %204 = arith.addf %202, %203 : vector<2x128xf32>
    %205 = arith.negf %204 : vector<2x128xf32>
    %206 = math.exp %205 : vector<2x128xf32>
    %cst_39 = arith.constant 1.000000e+00 : f32
    %207 = vector.broadcast %cst_39 : f32 to vector<2x128xf32>
    %208 = arith.addf %207, %206 : vector<2x128xf32>
    %209 = arith.divf %207, %208 : vector<2x128xf32>
    %210 = math.tanh %204 : vector<2x128xf32>
    %211 = vector.extract_strided_slice %209 {offsets = [0, 32], sizes = [2, 32], strides = [1, 1]} : vector<2x128xf32> to vector<2x32xf32>
    %212 = arith.mulf %211, %179 : vector<2x32xf32>
    %213 = vector.extract_strided_slice %209 {offsets = [0, 0], sizes = [2, 32], strides = [1, 1]} : vector<2x128xf32> to vector<2x32xf32>
    %214 = vector.extract_strided_slice %210 {offsets = [0, 64], sizes = [2, 32], strides = [1, 1]} : vector<2x128xf32> to vector<2x32xf32>
    %215 = arith.mulf %213, %214 : vector<2x32xf32>
    %216 = arith.addf %212, %215 : vector<2x32xf32>
    %217 = vector.extract_strided_slice %209 {offsets = [0, 96], sizes = [2, 32], strides = [1, 1]} : vector<2x128xf32> to vector<2x32xf32>
    %218 = math.tanh %216 : vector<2x32xf32>
    %219 = arith.mulf %217, %218 : vector<2x32xf32>
    %cst_40 = arith.constant dense<0.000000e+00> : vector<2x128xf32>
    %220 = tpu.matmul %219, %1, %cst_40 {dimension_numbers = #tpu.dot_dimension_numbers<[1], [0], [0], [1], [0, 0, 1, 1], [], []>} : vector<2x32xf32>, vector<32x128xf32>, vector<2x128xf32> -> vector<2x128xf32>
    %cst_41 = arith.constant dense<0.000000e+00> : vector<2x128xf32>
    %221 = tpu.matmul %201, %2, %cst_41 {dimension_numbers = #tpu.dot_dimension_numbers<[1], [0], [0], [1], [0, 0, 1, 1], [], []>} : vector<2x32xf32>, vector<32x128xf32>, vector<2x128xf32> -> vector<2x128xf32>
    %222 = arith.addf %220, %221 : vector<2x128xf32>
    %223 = arith.addf %222, %5 : vector<2x128xf32>
    %224 = arith.negf %223 : vector<2x128xf32>
    %225 = math.exp %224 : vector<2x128xf32>
    %cst_42 = arith.constant 1.000000e+00 : f32
    %226 = vector.broadcast %cst_42 : f32 to vector<2x128xf32>
    %227 = arith.addf %226, %225 : vector<2x128xf32>
    %228 = arith.divf %226, %227 : vector<2x128xf32>
    %229 = math.tanh %223 : vector<2x128xf32>
    %230 = vector.extract_strided_slice %228 {offsets = [0, 32], sizes = [2, 32], strides = [1, 1]} : vector<2x128xf32> to vector<2x32xf32>
    %231 = arith.mulf %230, %198 : vector<2x32xf32>
    %232 = vector.extract_strided_slice %228 {offsets = [0, 0], sizes = [2, 32], strides = [1, 1]} : vector<2x128xf32> to vector<2x32xf32>
    %233 = vector.extract_strided_slice %229 {offsets = [0, 64], sizes = [2, 32], strides = [1, 1]} : vector<2x128xf32> to vector<2x32xf32>
    %234 = arith.mulf %232, %233 : vector<2x32xf32>
    %235 = arith.addf %231, %234 : vector<2x32xf32>
    %236 = vector.extract_strided_slice %228 {offsets = [0, 96], sizes = [2, 32], strides = [1, 1]} : vector<2x128xf32> to vector<2x32xf32>
    %237 = math.tanh %235 : vector<2x32xf32>
    %238 = arith.mulf %236, %237 : vector<2x32xf32>
    %239 = vector.extract_strided_slice %12 {offsets = [12, 0], sizes = [2, 128], strides = [1, 1]} : vector<16x128xf32> to vector<2x128xf32>
    %cst_43 = arith.constant dense<0.000000e+00> : vector<2x128xf32>
    %240 = tpu.matmul %219, %0, %cst_43 {dimension_numbers = #tpu.dot_dimension_numbers<[1], [0], [0], [1], [0, 0, 1, 1], [], []>} : vector<2x32xf32>, vector<32x128xf32>, vector<2x128xf32> -> vector<2x128xf32>
    %241 = arith.addf %239, %240 : vector<2x128xf32>
    %242 = arith.negf %241 : vector<2x128xf32>
    %243 = math.exp %242 : vector<2x128xf32>
    %cst_44 = arith.constant 1.000000e+00 : f32
    %244 = vector.broadcast %cst_44 : f32 to vector<2x128xf32>
    %245 = arith.addf %244, %243 : vector<2x128xf32>
    %246 = arith.divf %244, %245 : vector<2x128xf32>
    %247 = math.tanh %241 : vector<2x128xf32>
    %248 = vector.extract_strided_slice %246 {offsets = [0, 32], sizes = [2, 32], strides = [1, 1]} : vector<2x128xf32> to vector<2x32xf32>
    %249 = arith.mulf %248, %216 : vector<2x32xf32>
    %250 = vector.extract_strided_slice %246 {offsets = [0, 0], sizes = [2, 32], strides = [1, 1]} : vector<2x128xf32> to vector<2x32xf32>
    %251 = vector.extract_strided_slice %247 {offsets = [0, 64], sizes = [2, 32], strides = [1, 1]} : vector<2x128xf32> to vector<2x32xf32>
    %252 = arith.mulf %250, %251 : vector<2x32xf32>
    %253 = arith.addf %249, %252 : vector<2x32xf32>
    %254 = vector.extract_strided_slice %246 {offsets = [0, 96], sizes = [2, 32], strides = [1, 1]} : vector<2x128xf32> to vector<2x32xf32>
    %255 = math.tanh %253 : vector<2x32xf32>
    %256 = arith.mulf %254, %255 : vector<2x32xf32>
    %cst_45 = arith.constant dense<0.000000e+00> : vector<2x128xf32>
    %257 = tpu.matmul %256, %1, %cst_45 {dimension_numbers = #tpu.dot_dimension_numbers<[1], [0], [0], [1], [0, 0, 1, 1], [], []>} : vector<2x32xf32>, vector<32x128xf32>, vector<2x128xf32> -> vector<2x128xf32>
    %cst_46 = arith.constant dense<0.000000e+00> : vector<2x128xf32>
    %258 = tpu.matmul %238, %2, %cst_46 {dimension_numbers = #tpu.dot_dimension_numbers<[1], [0], [0], [1], [0, 0, 1, 1], [], []>} : vector<2x32xf32>, vector<32x128xf32>, vector<2x128xf32> -> vector<2x128xf32>
    %259 = arith.addf %257, %258 : vector<2x128xf32>
    %260 = arith.addf %259, %5 : vector<2x128xf32>
    %261 = arith.negf %260 : vector<2x128xf32>
    %262 = math.exp %261 : vector<2x128xf32>
    %cst_47 = arith.constant 1.000000e+00 : f32
    %263 = vector.broadcast %cst_47 : f32 to vector<2x128xf32>
    %264 = arith.addf %263, %262 : vector<2x128xf32>
    %265 = arith.divf %263, %264 : vector<2x128xf32>
    %266 = math.tanh %260 : vector<2x128xf32>
    %267 = vector.extract_strided_slice %265 {offsets = [0, 32], sizes = [2, 32], strides = [1, 1]} : vector<2x128xf32> to vector<2x32xf32>
    %268 = arith.mulf %267, %235 : vector<2x32xf32>
    %269 = vector.extract_strided_slice %265 {offsets = [0, 0], sizes = [2, 32], strides = [1, 1]} : vector<2x128xf32> to vector<2x32xf32>
    %270 = vector.extract_strided_slice %266 {offsets = [0, 64], sizes = [2, 32], strides = [1, 1]} : vector<2x128xf32> to vector<2x32xf32>
    %271 = arith.mulf %269, %270 : vector<2x32xf32>
    %272 = arith.addf %268, %271 : vector<2x32xf32>
    %273 = vector.extract_strided_slice %265 {offsets = [0, 96], sizes = [2, 32], strides = [1, 1]} : vector<2x128xf32> to vector<2x32xf32>
    %274 = math.tanh %272 : vector<2x32xf32>
    %275 = arith.mulf %273, %274 : vector<2x32xf32>
    %276 = vector.extract_strided_slice %12 {offsets = [14, 0], sizes = [2, 128], strides = [1, 1]} : vector<16x128xf32> to vector<2x128xf32>
    %cst_48 = arith.constant dense<0.000000e+00> : vector<2x128xf32>
    %277 = tpu.matmul %256, %0, %cst_48 {dimension_numbers = #tpu.dot_dimension_numbers<[1], [0], [0], [1], [0, 0, 1, 1], [], []>} : vector<2x32xf32>, vector<32x128xf32>, vector<2x128xf32> -> vector<2x128xf32>
    %278 = arith.addf %276, %277 : vector<2x128xf32>
    %279 = arith.negf %278 : vector<2x128xf32>
    %280 = math.exp %279 : vector<2x128xf32>
    %cst_49 = arith.constant 1.000000e+00 : f32
    %281 = vector.broadcast %cst_49 : f32 to vector<2x128xf32>
    %282 = arith.addf %281, %280 : vector<2x128xf32>
    %283 = arith.divf %281, %282 : vector<2x128xf32>
    %284 = math.tanh %278 : vector<2x128xf32>
    %285 = vector.extract_strided_slice %283 {offsets = [0, 32], sizes = [2, 32], strides = [1, 1]} : vector<2x128xf32> to vector<2x32xf32>
    %286 = arith.mulf %285, %253 : vector<2x32xf32>
    %287 = vector.extract_strided_slice %283 {offsets = [0, 0], sizes = [2, 32], strides = [1, 1]} : vector<2x128xf32> to vector<2x32xf32>
    %288 = vector.extract_strided_slice %284 {offsets = [0, 64], sizes = [2, 32], strides = [1, 1]} : vector<2x128xf32> to vector<2x32xf32>
    %289 = arith.mulf %287, %288 : vector<2x32xf32>
    %290 = arith.addf %286, %289 : vector<2x32xf32>
    %291 = vector.extract_strided_slice %283 {offsets = [0, 96], sizes = [2, 32], strides = [1, 1]} : vector<2x128xf32> to vector<2x32xf32>
    %292 = math.tanh %290 : vector<2x32xf32>
    %293 = arith.mulf %291, %292 : vector<2x32xf32>
    %cst_50 = arith.constant dense<0.000000e+00> : vector<2x128xf32>
    %294 = tpu.matmul %293, %1, %cst_50 {dimension_numbers = #tpu.dot_dimension_numbers<[1], [0], [0], [1], [0, 0, 1, 1], [], []>} : vector<2x32xf32>, vector<32x128xf32>, vector<2x128xf32> -> vector<2x128xf32>
    %cst_51 = arith.constant dense<0.000000e+00> : vector<2x128xf32>
    %295 = tpu.matmul %275, %2, %cst_51 {dimension_numbers = #tpu.dot_dimension_numbers<[1], [0], [0], [1], [0, 0, 1, 1], [], []>} : vector<2x32xf32>, vector<32x128xf32>, vector<2x128xf32> -> vector<2x128xf32>
    %296 = arith.addf %294, %295 : vector<2x128xf32>
    %297 = arith.addf %296, %5 : vector<2x128xf32>
    %298 = arith.negf %297 : vector<2x128xf32>
    %299 = math.exp %298 : vector<2x128xf32>
    %cst_52 = arith.constant 1.000000e+00 : f32
    %300 = vector.broadcast %cst_52 : f32 to vector<2x128xf32>
    %301 = arith.addf %300, %299 : vector<2x128xf32>
    %302 = arith.divf %300, %301 : vector<2x128xf32>
    %303 = math.tanh %297 : vector<2x128xf32>
    %304 = vector.extract_strided_slice %302 {offsets = [0, 32], sizes = [2, 32], strides = [1, 1]} : vector<2x128xf32> to vector<2x32xf32>
    %305 = arith.mulf %304, %272 : vector<2x32xf32>
    %306 = vector.extract_strided_slice %302 {offsets = [0, 0], sizes = [2, 32], strides = [1, 1]} : vector<2x128xf32> to vector<2x32xf32>
    %307 = vector.extract_strided_slice %303 {offsets = [0, 64], sizes = [2, 32], strides = [1, 1]} : vector<2x128xf32> to vector<2x32xf32>
    %308 = arith.mulf %306, %307 : vector<2x32xf32>
    %309 = arith.addf %305, %308 : vector<2x32xf32>
    %310 = vector.extract_strided_slice %302 {offsets = [0, 96], sizes = [2, 32], strides = [1, 1]} : vector<2x128xf32> to vector<2x32xf32>
    %311 = math.tanh %309 : vector<2x32xf32>
    %312 = arith.mulf %310, %311 : vector<2x32xf32>
    %313 = vector.broadcast %6 : vector<1x32xf32> to vector<2x32xf32>
    %314 = arith.mulf %312, %313 : vector<2x32xf32>
    %cst_53 = arith.constant dense<0.000000e+00> : vector<2xf32>
    %315 = vector.multi_reduction <add>, %314, %cst_53 [1] : vector<2x32xf32> to vector<2xf32>
    %316 = vector.shape_cast %315 : vector<2xf32> to vector<2x1xf32>
    %c0_54 = arith.constant 0 : index
    %317 = memref.load %arg3[%c0_54] : memref<1xf32, #tpu.memory_space<smem>>
    %318 = vector.broadcast %317 : f32 to vector<2x1xf32>
    %319 = arith.addf %316, %318 : vector<2x1xf32>
    %c0_55 = arith.constant 0 : index
    %c0_56 = arith.constant 0 : index
    %320 = vector.load %arg4[%c0_55, %c0_56] : memref<2x1xf32, #tpu.memory_space<vmem>>, vector<2x1xf32>
    tpu.vector_store %arg4[%c0_55, %c0_56], %319 {strides = array<i32>} : memref<2x1xf32, #tpu.memory_space<vmem>>, vector<2x1xf32>,
    return
  }
  func.func @transform_0(%arg0: i32) -> (i32, i32) {
    %c0_i32 = arith.constant 0 : i32
    %c0_i32_0 = arith.constant 0 : i32
    %c0_i32_1 = arith.constant 0 : i32
    return %c0_i32, %c0_i32_0 : i32, i32
  }
  func.func @transform_1(%arg0: i32) -> (i32, i32) {
    %c0_i32 = arith.constant 0 : i32
    %c0_i32_0 = arith.constant 0 : i32
    %c0_i32_1 = arith.constant 0 : i32
    return %c0_i32, %c0_i32_0 : i32, i32
  }
  func.func @transform_2(%arg0: i32) -> i32 {
    %c0_i32 = arith.constant 0 : i32
    %c0_i32_0 = arith.constant 0 : i32
    return %c0_i32 : i32
  }
  func.func @transform_3(%arg0: i32) -> (i32, i32) {
    %c0_i32 = arith.constant 0 : i32
    %c0_i32_0 = arith.constant 0 : i32
    %c0_i32_1 = arith.constant 0 : i32
    return %c0_i32, %c0_i32_0 : i32, i32
  }
}

</mosaic_0001>

<bundles_post_ra>
// kernel: tpu_custom_call.1
= control target key start
LH: loop header
LB: loop body
LE: loop exit
PB: predicated region body
PF: predicated region fallthrough
CT: control target
= control target key end

     0   :  { %9 = vsyncpa [#allocation4], 0  ;;  %s2979_s12 = smov [#allocation3]   ;;  %s3434_s0 = inlined_call_operand.vmem [shape: f32[16,4], index: 0, kind: input, shape index: {}]   ;;  %s3435_s1 = inlined_call_operand.hbm [shape: f32[128,128], index: 1, kind: input, shape index: {}]   ;;  %s3436_s2 = inlined_call_operand.<no memory space> [shape: f32[1], index: 2, kind: input, shape index: {}]   ;;  %s3437_s3 = inlined_call_operand.vmem [shape: f32[2,1], index: 3, kind: output, shape index: {}]  }
   0x1   :  { %s17_s13 = sshll.u32 %s2979_s12, 4  ;;  %s18_s13 = int_to_ptr.vmem [resolvable:$true] %s17_s13 }
   0x2   :  { %s2965_s14 = scalar_lea.vmem %s18_s13, 2048  ;;  %p2970_p1 = scmp.lt.s32.totalorder %s18_s13, %s18_s13 }
   0x3   :  { %p2966_p0 = scmp.ne.s32.totalorder %s18_s13, %s2965_s14  ;;  %p2971_p2 = scmp.lt.s32.totalorder %s2965_s14, %s2965_s14 }
   0x5   :  { %p2972_p3 = por %p2971_p2, %p2970_p1 }
   0x7   :  { %p2973_p4 = pnand %p2972_p3, %p2966_p0 }
   0x9   :  { %2976 = shalt.err (!%p2973_p4)
}
   0xa   :  { %s2980_s15 = smov 128   ;;  %s2981_s16 = smov 8  }
   0xb   :  { %23 = dma.hbm_to_vmem [thread:$0]  %s3435_s1, 2048, %s18_s13, [#allocation4], %s2980_s15, %s2980_s15, %s2981_s16  }
   0xc   :  { %2977 = dma.done.wait [#allocation4], 2048  }
   0xd   :  { %2978 = vsyncadd [#allocation4], 4294965248  ;;  %v2982_v0 = vmov 0.0   ;;  %vm2983_vm0 = vmmov 0   ;;  %vm62_vm1 = vcmask 1043456   ;;  %vm55_vm2 = vcmask 31744  }
   0xe   :  { %2544 = vmatprep.subr.mxu1 %v2982_v0  ;;  %2552 = vmatprep.mubr.msk.f32.mxu1 %vm2983_vm0, %v2982_v0  ;;  %v49_v1 = vld [vmem:[#allocation3] sm:$0xf]  ;;  %v48_v4 = vld [vmem:[%s3434_s0 + $0x8] sm:$0xff]  ;;  %v3022_v5 = vld [vmem:[#allocation3 + $0x18] sm:$0xff]  ;;  %s2985_s22 = smov 32   ;;  %vm141_vm3 = vcmask 261120  }
   0xf   :  { %v3013_v2 = vld [vmem:[#allocation3 + $0x20] sm:$0xff]  ;;  %2539 = vmatprep.subr.msk.mxu0 %vm62_vm1, %v49_v1  ;;  %v3025_v6 = vld [vmem:[#allocation3 + $0x10] sm:$0xff]  ;;  %v3030_v7 = vld [vmem:[#allocation3 + $0x8] sm:$0xff]  ;;  %s2986_s23 = smov 96   ;;  %vm2358_vm4 = vcmask 254976   ;;  %vm2365_vm5 = vcmask 1024  }
  0x10   :  { %v47_v3 = vld [vmem:[%s3434_s0] sm:$0xff]  ;;  %2545 = vmatpush3.msra.mxu1 %v3013_v2  ;;  %2540 = vmatpush3.msk.msra.mxu0 %vm62_vm1, %v49_v1  ;;  %v2373_v8 = vld [vmem:[#allocation3 + $0x28] ss:$0 sm:$0xff]  ;;  %s2984_s0 = smov 64   ;;  %v3061_v30 = vld [vmem:[#allocation3 + $0x58] sm:$0xff] }
  0x11   :  { %2541 = vmatprep.mubr.msk.f32.mxu0 %vm55_vm2, %v47_v3  ;;  %2546 = vmatprep.subr.mxu1 %v2982_v0  ;;  %v3051_v26 = vld [vmem:[#allocation3 + $0x68] sm:$0xff]  ;;  %v3053_v27 = vld [vmem:[#allocation3 + $0x60] sm:$0xff]  ;;  %v3066_v31 = vld [vmem:[#allocation3 + $0x38] sm:$0xff] }
  0x12   :  { %2542 = vmatmul.mubr.msk.f32.vlgmr.msra.gmra.mxu0 %vm55_vm2, %v48_v4  ;;  %2547 = vmatpush3.msra.mxu1 %v3022_v5  ;;  %v3056_v28 = vld [vmem:[#allocation3 + $0x48] sm:$0xff]  ;;  %v3058_v29 = vld [vmem:[#allocation3 + $0x40] sm:$0xff]  ;;  %v3069_v32 = vld [vmem:[#allocation3 + $0x50] sm:$0xff] }
  0x13   :  { %2555 = vmatprep.subr.mxu0 %v2982_v0  ;;  %2548 = vmatprep.subr.mxu1 %v2982_v0  ;;  %v3076_v33 = vld [vmem:[#allocation3 + $0x30] sm:$0xff] }
  0x14   :  { %2563 = vmatprep.mubr.msk.f32.mxu0 %vm2983_vm0, %v2982_v0  ;;  %2549 = vmatpush3.msra.mxu1 %v3025_v6  ;;  %v3118_v40 = vld [vmem:[#allocation3 + $0x70] ss:$0 sm:$0xff] }
  0x15   :  { %2550 = vmatprep.subr.mxu1 %v2982_v0  ;;  %2556 = vmatpush3.msra.mxu0 %v3051_v26 }
  0x16   :  { %2551 = vmatpush3.msra.mxu1 %v3030_v7  ;;  %2557 = vmatprep.subr.mxu0 %v2982_v0 }
  0x17   :  { %2553 = vmatmul.mubr.f32.vlgmr.msra.gmra.mxu1 %v2982_v0  ;;  %2566 = vmatprep.subr.mxu1 %v2982_v0 }
  0x18   :  { %2574 = vmatprep.mubr.msk.f32.mxu1 %vm2983_vm0, %v2982_v0  ;;  %2567 = vmatpush3.msra.mxu1 %v3056_v28 }
  0x19   :  { %2558 = vmatpush3.msra.mxu0 %v3053_v27  ;;  %2568 = vmatprep.subr.mxu1 %v2982_v0 }
  0x1a   :  { %2559 = vmatprep.subr.mxu0 %v2982_v0  ;;  %2569 = vmatpush3.msra.mxu1 %v3058_v29 }
  0x1b   :  { %2560 = vmatpush3.msra.mxu0 %v3061_v30  ;;  %2570 = vmatprep.subr.mxu1 %v2982_v0 }
  0x1c   :  { %2561 = vmatprep.subr.mxu0 %v2982_v0  ;;  %2571 = vmatpush3.msra.mxu1 %v3066_v31 }
  0x1d   :  { %2562 = vmatpush3.msra.mxu0 %v3069_v32  ;;  %2572 = vmatprep.subr.mxu1 %v2982_v0 }
  0x1e   :  { %2564 = vmatmul.mubr.f32.vlgmr.msra.gmra.mxu0 %v2982_v0  ;;  %2577 = vmatprep.subr.mxu0 %v2982_v0 }
  0x1f   :  { %2578 = vmatpush3.msra.mxu0 %v3013_v2  ;;  %2573 = vmatpush3.msra.mxu1 %v3076_v33 }
  0x20   :  { %2579 = vmatprep.subr.mxu0 %v2982_v0  ;;  %2585 = vmatprep.mubr.msk.f32.mxu0 %vm2983_vm0, %v2982_v0 }
  0x21   :  { %2580 = vmatpush3.msra.mxu0 %v3022_v5  ;;  %2588 = vmatprep.subr.mxu1 %v2982_v0 }
  0x22   :  { %2581 = vmatprep.subr.mxu0 %v2982_v0 }
  0x23   :  { %2582 = vmatpush3.msra.mxu0 %v3025_v6 }
  0x24   :  { %2583 = vmatprep.subr.mxu0 %v2982_v0 }
  0x25   :  { %2584 = vmatpush3.msra.mxu0 %v3030_v7 }
  0x26   :  { %2599 = vmatprep.subr.mxu0 %v2982_v0 }
  0xd2   :  { %v2543_v9 = vpop.f32.mrf.mxu0 }
  0xd3   :  { %v3041_v10 = vadd.f32 %v2543_v9, %v2373_v8 }
  0xd4   :  { %v132_v11 = vpop.f32.mrf.mxu0 }
  0xd5   :  { %v3043_v12 = vadd.f32 %v2373_v8, %v132_v11 }
  0xd7   :  { %v211_v13 = vpop.f32.mrf.mxu1 }
  0xd8   :  { %v215_v14 = vadd.f32 %v211_v13, %v3043_v12 }
  0xd9   :  { %v2554_v15 = vpop.f32.mrf.mxu1 }
  0xda   :  { %2816 = vtanh.f32 %v215_v14  ;;  %v2377_v17 = vmul.f32 -1.442695, %v215_v14 }
  0xdc   :  { %2818 = vpow2.f32 %v2377_v17 }
  0xde   :  { %v306_v37 = vpop.f32.mrf.mxu0 }
  0xe0   :  { %v2565_v38 = vpop.f32.mrf.mxu0 }
  0xe7   :  { %v2817_v16 = vpop.eup %2816 }
  0xe8   :  { %225 = vrot.lane.b32.xlu0 %v2817_v16, %s2984_s0 }
  0xe9   :  { %v2819_v18 = vpop.eup %2818 }
  0xea   :  { %v219_v19 = vadd.f32 1.0, %v2819_v18 }
  0xec   :  { %2820 = vrcp.f32 %v219_v19 }
  0xf9   :  { %v2821_v20 = vpop.eup %2820 }
  0xfa   :  { %v223_v23 = vmul.f32 0.0, %v2821_v20 }
 0x15a   :  { %v226_v21 = vpop.permute.xlu0 %225 }
 0x15b   :  { %v228_v22 = vmul.f32 %v2821_v20, %v226_v21 }
 0x15d   :  { %230 = vrot.lane.b32.xlu0 %v228_v22, %s2985_s22 }
 0x1cf   :  { %v231_v24 = vpop.permute.xlu0 %230 }
 0x1d0   :  { %v3048_v25 = vadd.f32 %v231_v24, %v223_v23 }
 0x1d2   :  { %2822 = vtanh.f32 %v3048_v25  ;;  %v492_v63 = vrot.slane %v3048_v25, 6 }
 0x1df   :  { %v2823_v34 = vpop.eup %2822 }
 0x1e0   :  { %236 = vrot.lane.b32.xlu1 %v2823_v34, %s2984_s0 }
 0x252   :  { %v237_v35 = vpop.permute.xlu1 %236 }
 0x253   :  { %v239_v36 = vmul.f32 %v2821_v20, %v237_v35 }
 0x255   :  { %311 = vrot.lane.b32.xlu1 %v239_v36, %s2985_s22 }
 0x2c7   :  { %v312_v39 = vpop.permute.xlu1 %311 }
 0x2c8   :  { %2575 = vmatmul.mubr.msk.f32.vlgmr.msra.gmra.mxu1 %vm141_vm3, %v312_v39  ;;  %2586 = vmatmul.mubr.msk.f32.vlgmr.msra.gmra.mxu0 %vm141_vm3, %v312_v39 }
 0x2c9   :  { %2589 = vmatpush3.msra.mxu1 %v3051_v26  ;;  %2600 = vmatpush3.msra.mxu0 %v3056_v28 }
 0x2ca   :  { %2590 = vmatprep.subr.mxu1 %v2982_v0  ;;  %2601 = vmatprep.subr.mxu0 %v2982_v0 }
 0x2cb   :  { %2591 = vmatpush3.msra.mxu1 %v3053_v27  ;;  %2602 = vmatpush3.msra.mxu0 %v3058_v29 }
 0x2cc   :  { %2592 = vmatprep.subr.mxu1 %v2982_v0  ;;  %2603 = vmatprep.subr.mxu0 %v2982_v0 }
 0x2cd   :  { %2593 = vmatpush3.msra.mxu1 %v3061_v30  ;;  %2596 = vmatprep.mubr.msk.f32.mxu1 %vm2983_vm0, %v2982_v0 }
 0x2ce   :  { %2594 = vmatprep.subr.mxu1 %v2982_v0  ;;  %2604 = vmatpush3.msra.mxu0 %v3066_v31 }
 0x2cf   :  { %2595 = vmatpush3.msra.mxu1 %v3069_v32  ;;  %2605 = vmatprep.subr.mxu0 %v2982_v0 }
 0x2d0   :  { %2610 = vmatprep.subr.mxu1 %v2982_v0  ;;  %2606 = vmatpush3.msra.mxu0 %v3076_v33 }
 0x2d1   :  { %2607 = vmatprep.mubr.msk.f32.mxu0 %vm2983_vm0, %v2982_v0  ;;  %2621 = vmatprep.subr.mxu0 %v2982_v0 }
 0x388   :  { %v381_v41 = vpop.f32.mrf.mxu1  ;;  %v476_v42 = vpop.f32.mrf.mxu0 }
 0x389   :  { %v382_v43 = vadd.f32 %v381_v41, %v306_v37  ;;  %v481_v44 = vrot.slane %v476_v42, 6 }
 0x38a   :  { %v2576_v45 = vpop.f32.mrf.mxu1  ;;  %v2587_v46 = vpop.f32.mrf.mxu0 }
 0x38b   :  { %v385_v47 = vadd.f32 %v3118_v40, %v382_v43  ;;  %v483_v48 = vadd.f32 %v481_v44, %v3043_v12 }
 0x38d   :  { %2824 = vtanh.f32 %v385_v47  ;;  %v2379_v51 = vmul.f32 -1.442695, %v385_v47  ;;  %v2381_v52 = vmul.f32 -1.442695, %v483_v48 }
 0x38e   :  { %2826 = vtanh.f32 %v483_v48 }
 0x38f   :  { %2828 = vpow2.f32 %v2379_v51 }
 0x390   :  { %2830 = vpow2.f32 %v2381_v52 }
 0x39a   :  { %v2825_v49 = vpop.eup %2824 }
 0x39b   :  { %v2827_v50 = vpop.eup %2826  ;;  %395 = vrot.lane.b32.xlu0 %v2825_v49, %s2984_s0 }
 0x39c   :  { %496 = vrot.lane.b32.xlu1 %v2827_v50, %s2984_s0  ;;  %v2829_v53 = vpop.eup %2828 }
 0x39d   :  { %v2831_v54 = vpop.eup %2830  ;;  %v389_v55 = vadd.f32 1.0, %v2829_v53 }
 0x39e   :  { %v487_v56 = vadd.f32 1.0, %v2831_v54 }
 0x39f   :  { %2832 = vrcp.f32 %v389_v55 }
 0x3a0   :  { %2834 = vrcp.f32 %v487_v56 }
 0x3ac   :  { %v2833_v57 = vpop.eup %2832 }
 0x3ad   :  { %v2835_v59 = vpop.eup %2834  ;;  %v393_v1 = vmul.f32 0.0, %v2833_v57 }
 0x3ae   :  { %v494_v3 = vmul.f32 %v2835_v59, %v492_v63 }
 0x40d   :  { %v396_v58 = vpop.permute.xlu0 %395 }
 0x40e   :  { %v497_v60 = vpop.permute.xlu1 %496  ;;  %v398_v61 = vmul.f32 %v2833_v57, %v396_v58 }
 0x40f   :  { %v499_v62 = vmul.f32 %v2835_v59, %v497_v60 }
 0x410   :  { %400 = vrot.lane.b32.xlu0 %v398_v61, %s2985_s22 }
 0x411   :  { %501 = vrot.lane.b32.xlu1 %v499_v62, %s2985_s22 }
 0x482   :  { %v401_v4 = vpop.permute.xlu0 %400 }
 0x483   :  { %v502_v8 = vpop.permute.xlu1 %501  ;;  %v3127_v9 = vadd.f32 %v401_v4, %v393_v1 }
 0x484   :  { %v3129_v11 = vadd.f32 %v502_v8, %v494_v3 }
 0x485   :  { %2836 = vtanh.f32 %v3127_v9 }
 0x486   :  { %2838 = vtanh.f32 %v3129_v11  ;;  %v769_v58 = vrot.slane %v3129_v11, 6 }
 0x492   :  { %v2837_v13 = vpop.eup %2836 }
 0x493   :  { %v2839_v14 = vpop.eup %2838  ;;  %406 = vrot.lane.b32.xlu0 %v2837_v13, %s2984_s0 }
 0x494   :  { %507 = vrot.lane.b32.xlu1 %v2839_v14, %s2984_s0 }
 0x505   :  { %v407_v15 = vpop.permute.xlu0 %406 }
 0x506   :  { %v508_v16 = vpop.permute.xlu1 %507  ;;  %v409_v17 = vmul.f32 %v2833_v57, %v407_v15 }
 0x507   :  { %v510_v18 = vmul.f32 %v2835_v59, %v508_v16 }
 0x508   :  { %512 = vrot.lane.b32.xlu0 %v409_v17, %s2985_s22 }
 0x509   :  { %v587_v19 = vrot.slane %v510_v18, 2 }
 0x50b   :  { %588 = vrot.lane.b32.xlu1 %v587_v19, %s2985_s22 }
 0x57a   :  { %v513_v20 = vpop.permute.xlu0 %512 }
 0x57b   :  { %2597 = vmatmul.mubr.msk.f32.vlgmr.msra.gmra.mxu1 %vm141_vm3, %v513_v20 }
 0x57c   :  { %2611 = vmatpush3.msra.mxu1 %v3013_v2  ;;  %2618 = vmatprep.mubr.msk.f32.mxu1 %vm2983_vm0, %v2982_v0 }
 0x57d   :  { %v589_v21 = vpop.permute.xlu1 %588  ;;  %2612 = vmatprep.subr.mxu1 %v2982_v0 }
 0x57e   :  { %2608 = vmatmul.mubr.msk.f32.vlgmr.msra.gmra.mxu0 %vm141_vm3, %v589_v21  ;;  %2613 = vmatpush3.msra.mxu1 %v3022_v5 }
 0x57f   :  { %2614 = vmatprep.subr.mxu1 %v2982_v0  ;;  %2622 = vmatpush3.msra.mxu0 %v3051_v26 }
 0x580   :  { %2615 = vmatpush3.msra.mxu1 %v3025_v6  ;;  %2623 = vmatprep.subr.mxu0 %v2982_v0 }
 0x581   :  { %2616 = vmatprep.subr.mxu1 %v2982_v0  ;;  %2624 = vmatpush3.msra.mxu0 %v3053_v27 }
 0x582   :  { %2617 = vmatpush3.msra.mxu1 %v3030_v7  ;;  %2625 = vmatprep.subr.mxu0 %v2982_v0 }
 0x583   :  { %2619 = vmatmul.mubr.msk.f32.vlgmr.msra.gmra.mxu1 %vm141_vm3, %v589_v21  ;;  %2626 = vmatpush3.msra.mxu0 %v3061_v30 }
 0x584   :  { %2627 = vmatprep.subr.mxu0 %v2982_v0  ;;  %2629 = vmatprep.mubr.msk.f32.mxu0 %vm2983_vm0, %v2982_v0 }
 0x585   :  { %2628 = vmatpush3.msra.mxu0 %v3069_v32  ;;  %2632 = vmatprep.subr.mxu1 %v2982_v0 }
 0x586   :  { %2643 = vmatprep.subr.mxu0 %v2982_v0  ;;  %2633 = vmatpush3.msra.mxu1 %v3056_v28 }
 0x587   :  { %2634 = vmatprep.subr.mxu1 %v2982_v0  ;;  %2640 = vmatprep.mubr.msk.f32.mxu1 %vm2983_vm0, %v2982_v0 }
 0x588   :  { %2635 = vmatpush3.msra.mxu1 %v3058_v29 }
 0x589   :  { %2636 = vmatprep.subr.mxu1 %v2982_v0 }
 0x58a   :  { %2637 = vmatpush3.msra.mxu1 %v3066_v31 }
 0x58b   :  { %2638 = vmatprep.subr.mxu1 %v2982_v0 }
 0x58c   :  { %2639 = vmatpush3.msra.mxu1 %v3076_v33 }
 0x58d   :  { %2654 = vmatprep.subr.mxu1 %v2982_v0 }
 0x63b   :  { %v582_v22 = vpop.f32.mrf.mxu1 }
 0x63d   :  { %v2598_v23 = vpop.f32.mrf.mxu1 }
 0x63e   :  { %v658_v24 = vpop.f32.mrf.mxu0 }
 0x63f   :  { %v659_v25 = vadd.f32 %v658_v24, %v582_v22 }
 0x640   :  { %v2609_v34 = vpop.f32.mrf.mxu0 }
 0x641   :  { %v662_v35 = vadd.f32 %v3118_v40, %v659_v25 }
 0x643   :  { %2840 = vtanh.f32 %v662_v35  ;;  %v753_v36 = vpop.f32.mrf.mxu1  ;;  %v2384_v43 = vmul.f32 -1.442695, %v662_v35 }
 0x644   :  { %v758_v37 = vrot.slane %v753_v36, 4 }
 0x645   :  { %v2620_v38 = vpop.f32.mrf.mxu1 }
 0x646   :  { %v760_v39 = vadd.f32 %v758_v37, %v3043_v12 }
 0x648   :  { %2842 = vtanh.f32 %v760_v39  ;;  %v2386_v44 = vmul.f32 -1.442695, %v760_v39 }
 0x649   :  { %2844 = vpow2.f32 %v2384_v43 }
 0x64a   :  { %2846 = vpow2.f32 %v2386_v44 }
 0x650   :  { %v2841_v41 = vpop.eup %2840 }
 0x651   :  { %672 = vrot.lane.b32.xlu0 %v2841_v41, %s2984_s0 }
 0x655   :  { %v2843_v42 = vpop.eup %2842 }
 0x656   :  { %773 = vrot.lane.b32.xlu1 %v2843_v42, %s2984_s0  ;;  %v2845_v45 = vpop.eup %2844 }
 0x657   :  { %v666_v46 = vadd.f32 1.0, %v2845_v45  ;;  %v2847_v47 = vpop.eup %2846 }
 0x658   :  { %v764_v48 = vadd.f32 1.0, %v2847_v47 }
 0x659   :  { %2848 = vrcp.f32 %v666_v46 }
 0x65a   :  { %2850 = vrcp.f32 %v764_v48 }
 0x666   :  { %v2849_v49 = vpop.eup %2848 }
 0x667   :  { %v2851_v52 = vpop.eup %2850  ;;  %v670_v55 = vmul.f32 %v2849_v49, %v3127_v9 }
 0x668   :  { %v771_v59 = vmul.f32 %v2851_v52, %v769_v58 }
 0x6c3   :  { %v673_v50 = vpop.permute.xlu0 %672 }
 0x6c4   :  { %v675_v51 = vmul.f32 %v2849_v49, %v673_v50 }
 0x6c6   :  { %677 = vrot.lane.b32.xlu0 %v675_v51, %s2985_s22 }
 0x6c8   :  { %v774_v53 = vpop.permute.xlu1 %773 }
 0x6c9   :  { %v776_v54 = vmul.f32 %v2851_v52, %v774_v53 }
 0x6cb   :  { %778 = vrot.lane.b32.xlu1 %v776_v54, %s2985_s22 }
 0x738   :  { %v678_v56 = vpop.permute.xlu0 %677 }
 0x739   :  { %v3177_v57 = vadd.f32 %v678_v56, %v670_v55 }
 0x73b   :  { %2852 = vtanh.f32 %v3177_v57 }
 0x73d   :  { %v779_v60 = vpop.permute.xlu1 %778 }
 0x73e   :  { %v3181_v61 = vadd.f32 %v779_v60, %v771_v59 }
 0x740   :  { %2854 = vtanh.f32 %v3181_v61  ;;  %v1046_v46 = vrot.slane %v3181_v61, 6 }
 0x748   :  { %v2853_v62 = vpop.eup %2852 }
 0x749   :  { %683 = vrot.lane.b32.xlu0 %v2853_v62, %s2984_s0 }
 0x74d   :  { %v2855_v63 = vpop.eup %2854 }
 0x74e   :  { %784 = vrot.lane.b32.xlu1 %v2855_v63, %s2984_s0 }
 0x7bb   :  { %v684_v1 = vpop.permute.xlu0 %683 }
 0x7bc   :  { %v686_v3 = vmul.f32 %v2849_v49, %v684_v1 }
 0x7be   :  { %789 = vrot.lane.b32.xlu0 %v686_v3, %s2985_s22 }
 0x7c0   :  { %v785_v4 = vpop.permute.xlu1 %784 }
 0x7c1   :  { %v787_v8 = vmul.f32 %v2851_v52, %v785_v4 }
 0x7c3   :  { %v864_v9 = vrot.slane %v787_v8, 4 }
 0x7c5   :  { %865 = vrot.lane.b32.xlu1 %v864_v9, %s2985_s22 }
 0x830   :  { %v790_v11 = vpop.permute.xlu0 %789 }
 0x831   :  { %2630 = vmatmul.mubr.msk.f32.vlgmr.msra.gmra.mxu0 %vm141_vm3, %v790_v11 }
 0x832   :  { %2644 = vmatpush3.msra.mxu0 %v3013_v2  ;;  %2651 = vmatprep.mubr.msk.f32.mxu0 %vm2983_vm0, %v2982_v0 }
 0x833   :  { %2645 = vmatprep.subr.mxu0 %v2982_v0 }
 0x834   :  { %2646 = vmatpush3.msra.mxu0 %v3022_v5 }
 0x835   :  { %2647 = vmatprep.subr.mxu0 %v2982_v0 }
 0x836   :  { %2648 = vmatpush3.msra.mxu0 %v3025_v6 }
 0x837   :  { %2649 = vmatprep.subr.mxu0 %v2982_v0  ;;  %v866_v13 = vpop.permute.xlu1 %865 }
 0x838   :  { %2650 = vmatpush3.msra.mxu0 %v3030_v7  ;;  %2641 = vmatmul.mubr.msk.f32.vlgmr.msra.gmra.mxu1 %vm141_vm3, %v866_v13 }
 0x839   :  { %2652 = vmatmul.mubr.msk.f32.vlgmr.msra.gmra.mxu0 %vm141_vm3, %v866_v13  ;;  %2655 = vmatpush3.msra.mxu1 %v3051_v26 }
 0x83a   :  { %2656 = vmatprep.subr.mxu1 %v2982_v0  ;;  %2665 = vmatprep.subr.mxu0 %v2982_v0 }
 0x83b   :  { %2657 = vmatpush3.msra.mxu1 %v3053_v27  ;;  %2666 = vmatpush3.msra.mxu0 %v3056_v28 }
 0x83c   :  { %2658 = vmatprep.subr.mxu1 %v2982_v0  ;;  %2667 = vmatprep.subr.mxu0 %v2982_v0 }
 0x83d   :  { %2659 = vmatpush3.msra.mxu1 %v3061_v30  ;;  %2668 = vmatpush3.msra.mxu0 %v3058_v29 }
 0x83e   :  { %2660 = vmatprep.subr.mxu1 %v2982_v0  ;;  %2669 = vmatprep.subr.mxu0 %v2982_v0 }
 0x83f   :  { %2661 = vmatpush3.msra.mxu1 %v3069_v32  ;;  %2662 = vmatprep.mubr.msk.f32.mxu1 %vm2983_vm0, %v2982_v0 }
 0x840   :  { %2670 = vmatpush3.msra.mxu0 %v3066_v31  ;;  %2676 = vmatprep.subr.mxu1 %v2982_v0 }
 0x841   :  { %2671 = vmatprep.subr.mxu0 %v2982_v0  ;;  %2673 = vmatprep.mubr.msk.f32.mxu0 %vm2983_vm0, %v2982_v0 }
 0x842   :  { %2672 = vmatpush3.msra.mxu0 %v3076_v33 }
 0x843   :  { %2687 = vmatprep.subr.mxu0 %v2982_v0 }
 0x8f1   :  { %v859_v14 = vpop.f32.mrf.mxu0 }
 0x8f3   :  { %v2631_v15 = vpop.f32.mrf.mxu0 }
 0x8f8   :  { %v935_v16 = vpop.f32.mrf.mxu1 }
 0x8f9   :  { %v936_v17 = vadd.f32 %v935_v16, %v859_v14  ;;  %v1030_v18 = vpop.f32.mrf.mxu0 }
 0x8fa   :  { %v1035_v19 = vrot.slane %v1030_v18, 2  ;;  %v2642_v20 = vpop.f32.mrf.mxu1 }
 0x8fb   :  { %v939_v21 = vadd.f32 %v3118_v40, %v936_v17  ;;  %v2653_v22 = vpop.f32.mrf.mxu0 }
 0x8fc   :  { %v1037_v23 = vadd.f32 %v1035_v19, %v3043_v12 }
 0x8fd   :  { %2856 = vtanh.f32 %v939_v21  ;;  %v2389_v34 = vmul.f32 -1.442695, %v939_v21 }
 0x8fe   :  { %2858 = vtanh.f32 %v1037_v23  ;;  %v2391_v35 = vmul.f32 -1.442695, %v1037_v23 }
 0x8ff   :  { %2860 = vpow2.f32 %v2389_v34 }
 0x900   :  { %2862 = vpow2.f32 %v2391_v35 }
 0x90a   :  { %v2857_v24 = vpop.eup %2856 }
 0x90b   :  { %v2859_v25 = vpop.eup %2858  ;;  %949 = vrot.lane.b32.xlu1 %v2857_v24, %s2984_s0 }
 0x90c   :  { %1050 = vrot.lane.b32.xlu0 %v2859_v25, %s2984_s0  ;;  %v2861_v36 = vpop.eup %2860 }
 0x90d   :  { %v2863_v37 = vpop.eup %2862  ;;  %v943_v38 = vadd.f32 1.0, %v2861_v36 }
 0x90e   :  { %v1041_v39 = vadd.f32 1.0, %v2863_v37 }
 0x90f   :  { %2864 = vrcp.f32 %v943_v38 }
 0x910   :  { %2866 = vrcp.f32 %v1041_v39 }
 0x91c   :  { %v2865_v41 = vpop.eup %2864 }
 0x91d   :  { %v2867_v42 = vpop.eup %2866  ;;  %v947_v47 = vmul.f32 %v2865_v41, %v3177_v57 }
 0x91e   :  { %v1048_v48 = vmul.f32 %v2867_v42, %v1046_v46 }
 0x97d   :  { %v950_v12 = vpop.permute.xlu1 %949 }
 0x97e   :  { %v1051_v43 = vpop.permute.xlu0 %1050  ;;  %v952_v44 = vmul.f32 %v2865_v41, %v950_v12 }
 0x97f   :  { %v1053_v45 = vmul.f32 %v2867_v42, %v1051_v43 }
 0x980   :  { %954 = vrot.lane.b32.xlu1 %v952_v44, %s2985_s22 }
 0x981   :  { %1055 = vrot.lane.b32.xlu0 %v1053_v45, %s2985_s22 }
 0x9f2   :  { %v955_v49 = vpop.permute.xlu1 %954 }
 0x9f3   :  { %v1056_v50 = vpop.permute.xlu0 %1055  ;;  %v3229_v51 = vadd.f32 %v955_v49, %v947_v47 }
 0x9f4   :  { %v3231_v52 = vadd.f32 %v1056_v50, %v1048_v48 }
 0x9f5   :  { %2868 = vtanh.f32 %v3229_v51 }
 0x9f6   :  { %2870 = vtanh.f32 %v3231_v52  ;;  %v1320_v37 = vrot.slane %v3231_v52, 6 }
 0xa02   :  { %v2869_v53 = vpop.eup %2868 }
 0xa03   :  { %v2871_v54 = vpop.eup %2870  ;;  %960 = vrot.lane.b32.xlu1 %v2869_v53, %s2984_s0 }
 0xa04   :  { %1061 = vrot.lane.b32.xlu0 %v2871_v54, %s2984_s0 }
 0xa75   :  { %v961_v55 = vpop.permute.xlu1 %960 }
 0xa76   :  { %v1062_v56 = vpop.permute.xlu0 %1061  ;;  %v963_v57 = vmul.f32 %v2865_v41, %v961_v55 }
 0xa77   :  { %v1064_v58 = vmul.f32 %v2867_v42, %v1062_v56 }
 0xa78   :  { %1066 = vrot.lane.b32.xlu0 %v963_v57, %s2985_s22 }
 0xa79   :  { %v1141_v59 = vrot.slane %v1064_v58, 6 }
 0xa7b   :  { %1142 = vrot.lane.b32.xlu1 %v1141_v59, %s2985_s22 }
 0xaea   :  { %v1067_v60 = vpop.permute.xlu0 %1066 }
 0xaeb   :  { %2663 = vmatmul.mubr.msk.f32.vlgmr.msra.gmra.mxu1 %vm141_vm3, %v1067_v60 }
 0xaec   :  { %2677 = vmatpush3.msra.mxu1 %v3013_v2  ;;  %2684 = vmatprep.mubr.msk.f32.mxu1 %vm2983_vm0, %v2982_v0 }
 0xaed   :  { %2678 = vmatprep.subr.mxu1 %v2982_v0  ;;  %v1143_v61 = vpop.permute.xlu1 %1142 }
 0xaee   :  { %2674 = vmatmul.mubr.msk.f32.vlgmr.msra.gmra.mxu0 %vm141_vm3, %v1143_v61  ;;  %2679 = vmatpush3.msra.mxu1 %v3022_v5 }
 0xaef   :  { %2680 = vmatprep.subr.mxu1 %v2982_v0  ;;  %2688 = vmatpush3.msra.mxu0 %v3051_v26 }
 0xaf0   :  { %2681 = vmatpush3.msra.mxu1 %v3025_v6  ;;  %2689 = vmatprep.subr.mxu0 %v2982_v0 }
 0xaf1   :  { %2682 = vmatprep.subr.mxu1 %v2982_v0  ;;  %2690 = vmatpush3.msra.mxu0 %v3053_v27 }
 0xaf2   :  { %2683 = vmatpush3.msra.mxu1 %v3030_v7  ;;  %2691 = vmatprep.subr.mxu0 %v2982_v0 }
 0xaf3   :  { %2685 = vmatmul.mubr.msk.f32.vlgmr.msra.gmra.mxu1 %vm141_vm3, %v1143_v61  ;;  %2698 = vmatprep.subr.mxu1 %v2982_v0 }
 0xaf4   :  { %2692 = vmatpush3.msra.mxu0 %v3061_v30  ;;  %2699 = vmatpush3.msra.mxu1 %v3056_v28 }
 0xaf5   :  { %2693 = vmatprep.subr.mxu0 %v2982_v0  ;;  %2700 = vmatprep.subr.mxu1 %v2982_v0 }
 0xaf6   :  { %2694 = vmatpush3.msra.mxu0 %v3069_v32  ;;  %2701 = vmatpush3.msra.mxu1 %v3058_v29 }
 0xaf7   :  { %2695 = vmatprep.mubr.msk.f32.mxu0 %vm2983_vm0, %v2982_v0  ;;  %2702 = vmatprep.subr.mxu1 %v2982_v0 }
 0xaf8   :  { %2709 = vmatprep.subr.mxu0 %v2982_v0  ;;  %2703 = vmatpush3.msra.mxu1 %v3066_v31 }
 0xaf9   :  { %2704 = vmatprep.subr.mxu1 %v2982_v0  ;;  %2706 = vmatprep.mubr.msk.f32.mxu1 %vm2983_vm0, %v2982_v0 }
 0xafa   :  { %2705 = vmatpush3.msra.mxu1 %v3076_v33 }
 0xafb   :  { %2720 = vmatprep.subr.mxu1 %v2982_v0 }
 0xbab   :  { %v1136_v62 = vpop.f32.mrf.mxu1 }
 0xbad   :  { %v2664_v63 = vpop.f32.mrf.mxu1 }
 0xbae   :  { %v1212_v1 = vpop.f32.mrf.mxu0 }
 0xbaf   :  { %v1213_v3 = vadd.f32 %v1212_v1, %v1136_v62 }
 0xbb0   :  { %v2675_v4 = vpop.f32.mrf.mxu0 }
 0xbb1   :  { %v1216_v8 = vadd.f32 %v3118_v40, %v1213_v3 }
 0xbb3   :  { %2872 = vtanh.f32 %v1216_v8  ;;  %v1307_v9 = vpop.f32.mrf.mxu1  ;;  %v2394_v16 = vmul.f32 -1.442695, %v1216_v8 }
 0xbb4   :  { %v1311_v11 = vadd.f32 %v1307_v9, %v3041_v10 }
 0xbb5   :  { %v2686_v13 = vpop.f32.mrf.mxu1 }
 0xbb6   :  { %2874 = vtanh.f32 %v1311_v11  ;;  %v2396_v17 = vmul.f32 -1.442695, %v1311_v11 }
 0xbb7   :  { %2876 = vpow2.f32 %v2394_v16 }
 0xbb8   :  { %2878 = vpow2.f32 %v2396_v17 }
 0xbc0   :  { %v2873_v14 = vpop.eup %2872 }
 0xbc1   :  { %1226 = vrot.lane.b32.xlu0 %v2873_v14, %s2984_s0 }
 0xbc3   :  { %v2875_v15 = vpop.eup %2874 }
 0xbc4   :  { %1324 = vrot.lane.b32.xlu1 %v2875_v15, %s2984_s0  ;;  %v2877_v18 = vpop.eup %2876 }
 0xbc5   :  { %v2879_v19 = vpop.eup %2878  ;;  %v1220_v20 = vadd.f32 1.0, %v2877_v18 }
 0xbc6   :  { %v1315_v21 = vadd.f32 1.0, %v2879_v19 }
 0xbc7   :  { %2880 = vrcp.f32 %v1220_v20 }
 0xbc8   :  { %2882 = vrcp.f32 %v1315_v21 }
 0xbd4   :  { %v2881_v22 = vpop.eup %2880 }
 0xbd5   :  { %v2883_v25 = vpop.eup %2882  ;;  %v1224_v36 = vmul.f32 %v2881_v22, %v3229_v51 }
 0xbd6   :  { %v1322_v41 = vmul.f32 %v2883_v25, %v1320_v37 }
 0xc33   :  { %v1227_v23 = vpop.permute.xlu0 %1226 }
 0xc34   :  { %v1229_v24 = vmul.f32 %v2881_v22, %v1227_v23 }
 0xc36   :  { %1231 = vrot.lane.b32.xlu0 %v1229_v24, %s2985_s22  ;;  %v1325_v34 = vpop.permute.xlu1 %1324 }
 0xc37   :  { %v1327_v35 = vmul.f32 %v2883_v25, %v1325_v34 }
 0xc39   :  { %1329 = vrot.lane.b32.xlu1 %v1327_v35, %s2985_s22 }
 0xca8   :  { %v1232_v38 = vpop.permute.xlu0 %1231 }
 0xca9   :  { %v3280_v39 = vadd.f32 %v1232_v38, %v1224_v36 }
 0xcab   :  { %2884 = vtanh.f32 %v3280_v39  ;;  %v1330_v12 = vpop.permute.xlu1 %1329 }
 0xcac   :  { %v3283_v42 = vadd.f32 %v1330_v12, %v1322_v41 }
 0xcae   :  { %2886 = vtanh.f32 %v3283_v42  ;;  %v1596_v21 = vrot.slane %v3283_v42, 6 }
 0xcb8   :  { %v2885_v43 = vpop.eup %2884 }
 0xcb9   :  { %1237 = vrot.lane.b32.xlu0 %v2885_v43, %s2984_s0 }
 0xcbb   :  { %v2887_v44 = vpop.eup %2886 }
 0xcbc   :  { %1335 = vrot.lane.b32.xlu1 %v2887_v44, %s2984_s0 }
 0xd2b   :  { %v1238_v45 = vpop.permute.xlu0 %1237 }
 0xd2c   :  { %v1240_v46 = vmul.f32 %v2881_v22, %v1238_v45 }
 0xd2e   :  { %1340 = vrot.lane.b32.xlu0 %v1240_v46, %s2985_s22  ;;  %v1336_v47 = vpop.permute.xlu1 %1335 }
 0xd2f   :  { %v1338_v48 = vmul.f32 %v2883_v25, %v1336_v47 }
 0xd31   :  { %1415 = vrot.lane.b32.xlu1 %v1338_v48, %s2985_s22 }
 0xda0   :  { %v1341_v49 = vpop.permute.xlu0 %1340 }
 0xda1   :  { %2696 = vmatmul.mubr.msk.f32.vlgmr.msra.gmra.mxu0 %vm141_vm3, %v1341_v49 }
 0xda2   :  { %2710 = vmatpush3.msra.mxu0 %v3013_v2  ;;  %2717 = vmatprep.mubr.msk.f32.mxu0 %vm2983_vm0, %v2982_v0 }
 0xda3   :  { %2711 = vmatprep.subr.mxu0 %v2982_v0  ;;  %v1416_v50 = vpop.permute.xlu1 %1415 }
 0xda4   :  { %2712 = vmatpush3.msra.mxu0 %v3022_v5  ;;  %2707 = vmatmul.mubr.msk.f32.vlgmr.msra.gmra.mxu1 %vm141_vm3, %v1416_v50 }
 0xda5   :  { %2713 = vmatprep.subr.mxu0 %v2982_v0  ;;  %2721 = vmatpush3.msra.mxu1 %v3051_v26 }
 0xda6   :  { %2714 = vmatpush3.msra.mxu0 %v3025_v6  ;;  %2722 = vmatprep.subr.mxu1 %v2982_v0 }
 0xda7   :  { %2715 = vmatprep.subr.mxu0 %v2982_v0  ;;  %2723 = vmatpush3.msra.mxu1 %v3053_v27 }
 0xda8   :  { %2716 = vmatpush3.msra.mxu0 %v3030_v7  ;;  %2724 = vmatprep.subr.mxu1 %v2982_v0 }
 0xda9   :  { %2718 = vmatmul.mubr.msk.f32.vlgmr.msra.gmra.mxu0 %vm141_vm3, %v1416_v50  ;;  %2725 = vmatpush3.msra.mxu1 %v3061_v30 }
 0xdaa   :  { %2726 = vmatprep.subr.mxu1 %v2982_v0  ;;  %2731 = vmatprep.subr.mxu0 %v2982_v0 }
 0xdab   :  { %2727 = vmatpush3.msra.mxu1 %v3069_v32  ;;  %2728 = vmatprep.mubr.msk.f32.mxu1 %vm2983_vm0, %v2982_v0 }
 0xdac   :  { %2732 = vmatpush3.msra.mxu0 %v3056_v28  ;;  %2742 = vmatprep.subr.mxu1 %v2982_v0 }
 0xdad   :  { %2733 = vmatprep.subr.mxu0 %v2982_v0  ;;  %2739 = vmatprep.mubr.msk.f32.mxu0 %vm2983_vm0, %v2982_v0 }
 0xdae   :  { %2734 = vmatpush3.msra.mxu0 %v3058_v29 }
 0xdaf   :  { %2735 = vmatprep.subr.mxu0 %v2982_v0 }
 0xdb0   :  { %2736 = vmatpush3.msra.mxu0 %v3066_v31 }
 0xdb1   :  { %2737 = vmatprep.subr.mxu0 %v2982_v0 }
 0xdb2   :  { %2738 = vmatpush3.msra.mxu0 %v3076_v33 }
 0xdb3   :  { %2753 = vmatprep.subr.mxu0 %v2982_v0 }
 0xe61   :  { %v1410_v51 = vpop.f32.mrf.mxu0 }
 0xe63   :  { %v2697_v52 = vpop.f32.mrf.mxu0 }
 0xe64   :  { %v1485_v53 = vpop.f32.mrf.mxu1 }
 0xe65   :  { %v1486_v54 = vadd.f32 %v1485_v53, %v1410_v51 }
 0xe66   :  { %v2708_v55 = vpop.f32.mrf.mxu1 }
 0xe67   :  { %v1489_v56 = vadd.f32 %v3118_v40, %v1486_v54 }
 0xe69   :  { %2888 = vtanh.f32 %v1489_v56  ;;  %v1580_v57 = vpop.f32.mrf.mxu0  ;;  %v2399_v63 = vmul.f32 -1.442695, %v1489_v56 }
 0xe6a   :  { %v1585_v58 = vrot.slane %v1580_v57, 6 }
 0xe6b   :  { %v2719_v59 = vpop.f32.mrf.mxu0 }
 0xe6c   :  { %v1587_v60 = vadd.f32 %v1585_v58, %v3041_v10 }
 0xe6e   :  { %2890 = vtanh.f32 %v1587_v60  ;;  %v2401_v1 = vmul.f32 -1.442695, %v1587_v60 }
 0xe6f   :  { %2892 = vpow2.f32 %v2399_v63 }
 0xe70   :  { %2894 = vpow2.f32 %v2401_v1 }
 0xe76   :  { %v2889_v61 = vpop.eup %2888 }
 0xe77   :  { %1499 = vrot.lane.b32.xlu0 %v2889_v61, %s2984_s0 }
 0xe7b   :  { %v2891_v62 = vpop.eup %2890 }
 0xe7c   :  { %1600 = vrot.lane.b32.xlu1 %v2891_v62, %s2984_s0  ;;  %v2893_v3 = vpop.eup %2892 }
 0xe7d   :  { %v1493_v4 = vadd.f32 1.0, %v2893_v3  ;;  %v2895_v8 = vpop.eup %2894 }
 0xe7e   :  { %v1591_v9 = vadd.f32 1.0, %v2895_v8 }
 0xe7f   :  { %2896 = vrcp.f32 %v1493_v4 }
 0xe80   :  { %2898 = vrcp.f32 %v1591_v9  ;;  %v2944_v9 = vld [vmem:[#allocation3 + $0x20] sm:$0xff] }
 0xe8c   :  { %v2897_v11 = vpop.eup %2896 }
 0xe8d   :  { %v2899_v15 = vpop.eup %2898  ;;  %v1497_v18 = vmul.f32 %v2897_v11, %v3280_v39 }
 0xe8e   :  { %v1598_v22 = vmul.f32 %v2899_v15, %v1596_v21  ;;  %v2953_v21 = vld [vmem:[#allocation3 + $0x40] sm:$0xff] }
 0xee9   :  { %v1500_v13 = vpop.permute.xlu0 %1499 }
 0xeea   :  { %v1502_v14 = vmul.f32 %v2897_v11, %v1500_v13  ;;  %v2945_v13 = vld [vmem:[#allocation3 + $0x18] sm:$0xff] }
 0xeec   :  { %1504 = vrot.lane.b32.xlu0 %v1502_v14, %s2985_s22  ;;  %v2946_v14 = vld [vmem:[#allocation3 + $0x68] sm:$0xff] }
 0xeee   :  { %v1601_v16 = vpop.permute.xlu1 %1600 }
 0xeef   :  { %v1603_v17 = vmul.f32 %v2899_v15, %v1601_v16  ;;  %v2948_v16 = vld [vmem:[#allocation3 + $0x60] sm:$0xff] }
 0xef1   :  { %1605 = vrot.lane.b32.xlu1 %v1603_v17, %s2985_s22  ;;  %v2949_v17 = vld [vmem:[#allocation3 + $0x8] sm:$0xff] }
 0xf5e   :  { %v1505_v19 = vpop.permute.xlu0 %1504 }
 0xf5f   :  { %v3330_v20 = vadd.f32 %v1505_v19, %v1497_v18  ;;  %v2950_v18 = vld [vmem:[#allocation3 + $0x58] sm:$0xff]  ;;  %v2951_v19 = vld [vmem:[#allocation3 + $0x50] sm:$0xff] }
 0xf61   :  { %2900 = vtanh.f32 %v3330_v20 }
 0xf63   :  { %v1606_v23 = vpop.permute.xlu1 %1605 }
 0xf64   :  { %v3334_v24 = vadd.f32 %v1606_v23, %v1598_v22  ;;  %v2954_v22 = vld [vmem:[#allocation3 + $0x38] sm:$0xff]  ;;  %v2955_v23 = vld [vmem:[#allocation3 + $0x30] sm:$0xff] }
 0xf66   :  { %2902 = vtanh.f32 %v3334_v24  ;;  %v1873_v53 = vrot.slane %v3334_v24, 6 }
 0xf6e   :  { %v2901_v25 = vpop.eup %2900 }
 0xf6f   :  { %1510 = vrot.lane.b32.xlu0 %v2901_v25, %s2984_s0 }
 0xf73   :  { %v2903_v34 = vpop.eup %2902 }
 0xf74   :  { %1611 = vrot.lane.b32.xlu1 %v2903_v34, %s2984_s0 }
 0xfe1   :  { %v1511_v35 = vpop.permute.xlu0 %1510 }
 0xfe2   :  { %v1513_v36 = vmul.f32 %v2897_v11, %v1511_v35 }
 0xfe4   :  { %1616 = vrot.lane.b32.xlu0 %v1513_v36, %s2985_s22 }
 0xfe6   :  { %v1612_v37 = vpop.permute.xlu1 %1611 }
 0xfe7   :  { %v1614_v38 = vmul.f32 %v2899_v15, %v1612_v37  ;;  %v2947_v15 = vld [vmem:[#allocation3 + $0x10] sm:$0xff] }
 0xfe8   :  { %v2956_v37 = vld [vmem:[#allocation3 + $0x70] ss:$0 sm:$0xff] }
 0xfe9   :  { %v1691_v39 = vrot.slane %v1614_v38, 2 }
 0xfeb   :  { %1692 = vrot.lane.b32.xlu1 %v1691_v39, %s2985_s22 }
0x1056   :  { %v1617_v41 = vpop.permute.xlu0 %1616 }
0x1057   :  { %2729 = vmatmul.mubr.msk.f32.vlgmr.msra.gmra.mxu1 %vm141_vm3, %v1617_v41 }
0x1058   :  { %2743 = vmatpush3.msra.mxu1 %v3013_v2  ;;  %2750 = vmatprep.mubr.msk.f32.mxu1 %vm2983_vm0, %v2982_v0 }
0x1059   :  { %2744 = vmatprep.subr.mxu1 %v2982_v0 }
0x105a   :  { %2745 = vmatpush3.msra.mxu1 %v3022_v5 }
0x105b   :  { %2746 = vmatprep.subr.mxu1 %v2982_v0 }
0x105c   :  { %2747 = vmatpush3.msra.mxu1 %v3025_v6 }
0x105d   :  { %v1693_v12 = vpop.permute.xlu1 %1692  ;;  %2748 = vmatprep.subr.mxu1 %v2982_v0 }
0x105e   :  { %2740 = vmatmul.mubr.msk.f32.vlgmr.msra.gmra.mxu0 %vm141_vm3, %v1693_v12  ;;  %2749 = vmatpush3.msra.mxu1 %v3030_v7 }
0x105f   :  { %2751 = vmatmul.mubr.msk.f32.vlgmr.msra.gmra.mxu1 %vm141_vm3, %v1693_v12  ;;  %2754 = vmatpush3.msra.mxu0 %v3051_v26 }
0x1060   :  { %2755 = vmatprep.subr.mxu0 %v2982_v0  ;;  %2764 = vmatprep.subr.mxu1 %v2982_v0 }
0x1061   :  { %2756 = vmatpush3.msra.mxu0 %v3053_v27  ;;  %2765 = vmatpush3.msra.mxu1 %v3056_v28 }
0x1062   :  { %2757 = vmatprep.subr.mxu0 %v2982_v0  ;;  %2766 = vmatprep.subr.mxu1 %v2982_v0 }
0x1063   :  { %2758 = vmatpush3.msra.mxu0 %v3061_v30  ;;  %2767 = vmatpush3.msra.mxu1 %v3058_v29 }
0x1064   :  { %2759 = vmatprep.subr.mxu0 %v2982_v0  ;;  %2761 = vmatprep.mubr.msk.f32.mxu0 %vm2983_vm0, %v2982_v0 }
0x1065   :  { %2760 = vmatpush3.msra.mxu0 %v3069_v32  ;;  %2768 = vmatprep.subr.mxu1 %v2982_v0 }
0x1066   :  { %2775 = vmatprep.subr.mxu0 %v2982_v0  ;;  %2769 = vmatpush3.msra.mxu1 %v3066_v31 }
0x1067   :  { %2770 = vmatprep.subr.mxu1 %v2982_v0  ;;  %2772 = vmatprep.mubr.msk.f32.mxu1 %vm2983_vm0, %v2982_v0 }
0x1068   :  { %2771 = vmatpush3.msra.mxu1 %v3076_v33 }
0x1069   :  { %2786 = vmatprep.subr.mxu1 %v2982_v0 }
0x1117   :  { %v1686_v2 = vpop.f32.mrf.mxu1 }
0x1119   :  { %v2730_v5 = vpop.f32.mrf.mxu1 }
0x111e   :  { %v1762_v6 = vpop.f32.mrf.mxu0 }
0x111f   :  { %v1763_v7 = vadd.f32 %v1762_v6, %v1686_v2  ;;  %v1857_v26 = vpop.f32.mrf.mxu1 }
0x1120   :  { %v1862_v27 = vrot.slane %v1857_v26, 4  ;;  %v2741_v28 = vpop.f32.mrf.mxu0 }
0x1121   :  { %v1766_v29 = vadd.f32 %v3118_v40, %v1763_v7  ;;  %v2752_v30 = vpop.f32.mrf.mxu1 }
0x1122   :  { %v1864_v31 = vadd.f32 %v1862_v27, %v3041_v10 }
0x1123   :  { %2904 = vtanh.f32 %v1766_v29  ;;  %v2404_v33 = vmul.f32 -1.442695, %v1766_v29 }
0x1124   :  { %2906 = vtanh.f32 %v1864_v31  ;;  %v2406_v43 = vmul.f32 -1.442695, %v1864_v31 }
0x1125   :  { %2908 = vpow2.f32 %v2404_v33 }
0x1126   :  { %2910 = vpow2.f32 %v2406_v43 }
0x1130   :  { %v2905_v32 = vpop.eup %2904 }
0x1131   :  { %v2907_v42 = vpop.eup %2906  ;;  %1776 = vrot.lane.b32.xlu0 %v2905_v32, %s2984_s0 }
0x1132   :  { %1877 = vrot.lane.b32.xlu1 %v2907_v42, %s2984_s0  ;;  %v2909_v44 = vpop.eup %2908 }
0x1133   :  { %v2911_v45 = vpop.eup %2910  ;;  %v1770_v46 = vadd.f32 1.0, %v2909_v44 }
0x1134   :  { %v1868_v47 = vadd.f32 1.0, %v2911_v45 }
0x1135   :  { %2912 = vrcp.f32 %v1770_v46 }
0x1136   :  { %2914 = vrcp.f32 %v1868_v47 }
0x1142   :  { %v2913_v40 = vpop.eup %2912 }
0x1143   :  { %v2915_v49 = vpop.eup %2914  ;;  %v1774_v54 = vmul.f32 %v2913_v40, %v3330_v20  ;;  %v2952_v20 = vld [vmem:[#allocation3 + $0x48] sm:$0xff] }
0x1144   :  { %v1875_v56 = vmul.f32 %v2915_v49, %v1873_v53 }
0x11a3   :  { %v1777_v48 = vpop.permute.xlu0 %1776 }
0x11a4   :  { %v1779_v50 = vmul.f32 %v2913_v40, %v1777_v48  ;;  %v1878_v51 = vpop.permute.xlu1 %1877 }
0x11a5   :  { %v1880_v52 = vmul.f32 %v2915_v49, %v1878_v51 }
0x11a6   :  { %1781 = vrot.lane.b32.xlu0 %v1779_v50, %s2985_s22 }
0x11a7   :  { %1882 = vrot.lane.b32.xlu1 %v1880_v52, %s2985_s22 }
0x1218   :  { %v1782_v55 = vpop.permute.xlu0 %1781 }
0x1219   :  { %v3382_v57 = vadd.f32 %v1782_v55, %v1774_v54  ;;  %v1883_v58 = vpop.permute.xlu1 %1882 }
0x121a   :  { %v3384_v59 = vadd.f32 %v1883_v58, %v1875_v56 }
0x121b   :  { %2916 = vtanh.f32 %v3382_v57 }
0x121c   :  { %2918 = vtanh.f32 %v3384_v59  ;;  %v2150_v46 = vrot.slane %v3384_v59, 6 }
0x1228   :  { %v2917_v60 = vpop.eup %2916 }
0x1229   :  { %v2919_v61 = vpop.eup %2918  ;;  %1787 = vrot.lane.b32.xlu0 %v2917_v60, %s2984_s0 }
0x122a   :  { %1888 = vrot.lane.b32.xlu1 %v2919_v61, %s2984_s0 }
0x129b   :  { %v1788_v62 = vpop.permute.xlu0 %1787 }
0x129c   :  { %v1790_v63 = vmul.f32 %v2913_v40, %v1788_v62  ;;  %v1889_v1 = vpop.permute.xlu1 %1888 }
0x129d   :  { %v1891_v3 = vmul.f32 %v2915_v49, %v1889_v1 }
0x129e   :  { %1893 = vrot.lane.b32.xlu0 %v1790_v63, %s2985_s22 }
0x129f   :  { %v1968_v4 = vrot.slane %v1891_v3, 4 }
0x12a1   :  { %1969 = vrot.lane.b32.xlu1 %v1968_v4, %s2985_s22 }
0x1310   :  { %v1894_v8 = vpop.permute.xlu0 %1893 }
0x1311   :  { %2762 = vmatmul.mubr.msk.f32.vlgmr.msra.gmra.mxu0 %vm141_vm3, %v1894_v8 }
0x1312   :  { %2776 = vmatpush3.msra.mxu0 %v2944_v9  ;;  %2783 = vmatprep.mubr.msk.f32.mxu0 %vm2983_vm0, %v2982_v0 }
0x1313   :  { %2777 = vmatprep.subr.mxu0 %v2982_v0  ;;  %v1970_v11 = vpop.permute.xlu1 %1969 }
0x1314   :  { %2778 = vmatpush3.msra.mxu0 %v2945_v13  ;;  %2773 = vmatmul.mubr.msk.f32.vlgmr.msra.gmra.mxu1 %vm141_vm3, %v1970_v11 }
0x1315   :  { %2779 = vmatprep.subr.mxu0 %v2982_v0  ;;  %2787 = vmatpush3.msra.mxu1 %v2946_v14  ;;  %v2415_v14 = vld [vmem:[#allocation3 + $0x78] ss:$0 sm:$0xff] }
0x1316   :  { %2780 = vmatpush3.msra.mxu0 %v2947_v15  ;;  %2788 = vmatprep.subr.mxu1 %v2982_v0 }
0x1317   :  { %2781 = vmatprep.subr.mxu0 %v2982_v0  ;;  %2789 = vmatpush3.msra.mxu1 %v2948_v16 }
0x1318   :  { %2782 = vmatpush3.msra.mxu0 %v2949_v17  ;;  %2790 = vmatprep.subr.mxu1 %v2982_v0 }
0x1319   :  { %2784 = vmatmul.mubr.msk.f32.vlgmr.msra.gmra.mxu0 %vm141_vm3, %v1970_v11  ;;  %2791 = vmatpush3.msra.mxu1 %v2950_v18 }
0x131a   :  { %2792 = vmatprep.subr.mxu1 %v2982_v0  ;;  %2797 = vmatprep.subr.mxu0 %v2982_v0 }
0x131b   :  { %2793 = vmatpush3.msra.mxu1 %v2951_v19  ;;  %2794 = vmatprep.mubr.msk.f32.mxu1 %vm2983_vm0, %v2982_v0 }
0x131c   :  { %2798 = vmatpush3.msra.mxu0 %v2952_v20  ;;  %2805 = vmatprep.mubr.msk.f32.mxu0 %vm2983_vm0, %v2982_v0 }
0x131d   :  { %2799 = vmatprep.subr.mxu0 %v2982_v0 }
0x131e   :  { %2800 = vmatpush3.msra.mxu0 %v2953_v21 }
0x131f   :  { %2801 = vmatprep.subr.mxu0 %v2982_v0 }
0x1320   :  { %2802 = vmatpush3.msra.mxu0 %v2954_v22 }
0x1321   :  { %2803 = vmatprep.subr.mxu0 %v2982_v0 }
0x1322   :  { %2804 = vmatpush3.msra.mxu0 %v2955_v23 }
0x13d1   :  { %v1963_v24 = vpop.f32.mrf.mxu0 }
0x13d3   :  { %v2763_v25 = vpop.f32.mrf.mxu0 }
0x13d4   :  { %v2039_v34 = vpop.f32.mrf.mxu1  ;;  %v2363_v25 = vstv %s3436_s2 }
0x13d5   :  { %v2040_v35 = vadd.f32 %v2039_v34, %v1963_v24 }
0x13d6   :  { %v2774_v36 = vpop.f32.mrf.mxu1 }
0x13d7   :  { %v2043_v38 = vadd.f32 %v2956_v37, %v2040_v35 }
0x13d9   :  { %2920 = vtanh.f32 %v2043_v38  ;;  %v2134_v39 = vpop.f32.mrf.mxu0  ;;  %v2409_v6 = vmul.f32 -1.442695, %v2043_v38 }
0x13da   :  { %v2139_v41 = vrot.slane %v2134_v39, 2 }
0x13db   :  { %v2785_v12 = vpop.f32.mrf.mxu0 }
0x13dc   :  { %v2141_v2 = vadd.f32 %v2139_v41, %v3041_v10 }
0x13de   :  { %2922 = vtanh.f32 %v2141_v2  ;;  %v2411_v7 = vmul.f32 -1.442695, %v2141_v2 }
0x13df   :  { %2924 = vpow2.f32 %v2409_v6 }
0x13e0   :  { %2926 = vpow2.f32 %v2411_v7 }
0x13e6   :  { %v2921_v5 = vpop.eup %2920 }
0x13e7   :  { %2053 = vrot.lane.b32.xlu1 %v2921_v5, %s2984_s0 }
0x13eb   :  { %v2923_v0 = vpop.eup %2922 }
0x13ec   :  { %2154 = vrot.lane.b32.xlu0 %v2923_v0, %s2984_s0  ;;  %v2925_v26 = vpop.eup %2924 }
0x13ed   :  { %v2047_v27 = vadd.f32 1.0, %v2925_v26  ;;  %v2927_v28 = vpop.eup %2926 }
0x13ee   :  { %v2145_v29 = vadd.f32 1.0, %v2927_v28 }
0x13ef   :  { %2928 = vrcp.f32 %v2047_v27 }
0x13f0   :  { %2930 = vrcp.f32 %v2145_v29 }
0x13fc   :  { %v2929_v30 = vpop.eup %2928 }
0x13fd   :  { %v2931_v32 = vpop.eup %2930  ;;  %v2051_v43 = vmul.f32 %v2929_v30, %v3382_v57 }
0x13fe   :  { %v2152_v47 = vmul.f32 %v2931_v32, %v2150_v46 }
0x1459   :  { %v2054_v31 = vpop.permute.xlu1 %2053 }
0x145a   :  { %v2056_v10 = vmul.f32 %v2929_v30, %v2054_v31 }
0x145c   :  { %2058 = vrot.lane.b32.xlu1 %v2056_v10, %s2985_s22 }
0x145e   :  { %v2155_v42 = vpop.permute.xlu0 %2154 }
0x145f   :  { %v2157_v33 = vmul.f32 %v2931_v32, %v2155_v42 }
0x1461   :  { %2159 = vrot.lane.b32.xlu0 %v2157_v33, %s2985_s22 }
0x14ce   :  { %v2059_v44 = vpop.permute.xlu1 %2058 }
0x14cf   :  { %v2061_v45 = vadd.f32 %v2059_v44, %v2051_v43 }
0x14d1   :  { %2932 = vtanh.f32 %v2061_v45 }
0x14d3   :  { %v2160_v40 = vpop.permute.xlu0 %2159 }
0x14d4   :  { %v2162_v48 = vadd.f32 %v2160_v40, %v2152_v47 }
0x14d6   :  { %2934 = vtanh.f32 %v2162_v48 }
0x14de   :  { %v2933_v49 = vpop.eup %2932 }
0x14df   :  { %2064 = vrot.lane.b32.xlu1 %v2933_v49, %s2984_s0 }
0x14e3   :  { %v2935_v50 = vpop.eup %2934 }
0x14e4   :  { %2165 = vrot.lane.b32.xlu0 %v2935_v50, %s2984_s0 }
0x1551   :  { %v2065_v51 = vpop.permute.xlu1 %2064 }
0x1552   :  { %v2067_v52 = vmul.f32 %v2929_v30, %v2065_v51 }
0x1554   :  { %2170 = vrot.lane.b32.xlu0 %v2067_v52, %s2985_s22 }
0x1556   :  { %v2166_v53 = vpop.permute.xlu0 %2165 }
0x1557   :  { %v2168_v54 = vmul.f32 %v2931_v32, %v2166_v53 }
0x1559   :  { %v2245_v55 = vrot.slane %v2168_v54, 6 }
0x155b   :  { %2246 = vrot.lane.b32.xlu1 %v2245_v55, %s2985_s22 }
0x15c6   :  { %v2171_v56 = vpop.permute.xlu0 %2170 }
0x15c7   :  { %2795 = vmatmul.mubr.msk.f32.vlgmr.msra.gmra.mxu1 %vm141_vm3, %v2171_v56 }
0x15cd   :  { %v2247_v57 = vpop.permute.xlu1 %2246 }
0x15ce   :  { %2806 = vmatmul.mubr.msk.f32.vlgmr.msra.gmra.mxu0 %vm141_vm3, %v2247_v57 }
0x1687   :  { %v2240_v58 = vpop.f32.mrf.mxu1 }
0x1689   :  { %v2796_v59 = vpop.f32.mrf.mxu1 }
0x168e   :  { %v2316_v60 = vpop.f32.mrf.mxu0 }
0x168f   :  { %v2317_v61 = vadd.f32 %v2316_v60, %v2240_v58 }
0x1690   :  { %v2807_v62 = vpop.f32.mrf.mxu0 }
0x1691   :  { %v2320_v63 = vadd.f32 %v2956_v37, %v2317_v61 }
0x1693   :  { %2936 = vtanh.f32 %v2320_v63  ;;  %v2414_v3 = vmul.f32 -1.442695, %v2320_v63 }
0x1695   :  { %2938 = vpow2.f32 %v2414_v3 }
0x16a0   :  { %v2937_v1 = vpop.eup %2936 }
0x16a1   :  { %2330 = vrot.lane.b32.xlu0 %v2937_v1, %s2984_s0 }
0x16a2   :  { %v2939_v4 = vpop.eup %2938 }
0x16a3   :  { %v2324_v8 = vadd.f32 1.0, %v2939_v4 }
0x16a5   :  { %2940 = vrcp.f32 %v2324_v8 }
0x16b2   :  { %v2941_v9 = vpop.eup %2940 }
0x16b3   :  { %v2328_v15 = vmul.f32 %v2941_v9, %v2061_v45 }
0x1713   :  { %v2331_v11 = vpop.permute.xlu0 %2330 }
0x1714   :  { %v2333_v13 = vmul.f32 %v2941_v9, %v2331_v11 }
0x1716   :  { %2335 = vrot.lane.b32.xlu1 %v2333_v13, %s2985_s22 }
0x171a   :  { %2350 = vrot.lane.b32.xlu1 %v2415_v14, %s2986_s23 }
0x1788   :  { %v2336_v16 = vpop.permute.xlu1 %2335 }
0x1789   :  { %v2338_v17 = vadd.f32 %v2336_v16, %v2328_v15 }
0x178b   :  { %2942 = vtanh.f32 %v2338_v17 }
0x178c   :  { %v2351_v20 = vpop.permute.xlu1 %2350 }
0x1798   :  { %v2943_v18 = vpop.eup %2942 }
0x1799   :  { %2341 = vrot.lane.b32.xlu0 %v2943_v18, %s2984_s0 }
0x180b   :  { %v2342_v19 = vpop.permute.xlu0 %2341 }
0x180c   :  { %v2344_v21 = vmul.f32 %v2941_v9, %v2342_v19 }
0x180e   :  { %v2353_v22 = vmul.f32 %v2351_v20, %v2344_v21 }
0x1810   :  { %2355 = vrot.lane.b32.xlu0 %v2353_v22, %s2985_s22 }
0x1882   :  { %v2356_v23 = vpop.permute.xlu0 %2355 }
0x1883   :  { %v2359_v24 = vsel %vm2358_vm4, %v2356_v23, 0.0 }
0x1884   :  { %2360 = vadd.xlane.f32.xlu1 %v2359_v24 }
0x190d   :  { %v2361_v34 = vpop.xlane.xlu1 %2360 }
0x190e   :  { %v2364_v35 = vadd.f32 %v2363_v25, %v2361_v34 }
0x1910   :  { %2366 = vst.msk [vmem:[%s3437_s3] sm:$0x3] %vm2365_vm5, %v2364_v35 }
0x1911   :  { %2371 = vsyncpa [#allocation4], 1 }

</bundles_post_ra>
